<compile_context>
chip_gen: v6e
topology: v6e:2x2x1
jax: 0.10.0
libtpu: 0.0.40
codegen_flags: <defaults>
</compile_context>

<pallas_src>
import jax
import jax.numpy as jnp
from jax import lax
from jax.experimental import pallas as pl
from jax.experimental.pallas import tpu as pltpu

KSIZE = 4          # Dis_Block always uses kernel_size=4, padding=1 (reflect)
NEG_SLOPE = 0.2
EPS = 1e-5


def _round_up(x, m):
    return (x + m - 1) // m * m


# ----------------------------- Pallas kernels ------------------------------ #

def _make_conv_stats_kernel(stride, oh_total, ow, eps=EPS):
    """Conv (tap-decomposed) + fused per-(n, channel-slab) statistics.

    Grid: (N, Cout_p // tn, OH).  Per step: 16 matmuls (OW, Cin8)@(Cin8, tn)
    accumulated in f32 VMEM, bias added, one bf16 output row stored; row sums /
    sum-of-squares accumulate across the OH axis and mean / rstd are written on
    the last OH step.
    """
    k = KSIZE

    def kernel(r0, r1, r2, r3, w_ref, b_ref, o_ref, st_ref,
               acc_ref, ssum_ref, ssq_ref):
        rows = (r0, r1, r2, r3)
        oi = pl.program_id(2)

        for t in range(k * k):
            kh, kw = divmod(t, k)
            pw, dw = kw % stride, kw // stride
            # (OW, Cin8) contiguous static window of the stride-phase-split row.
            x_tap = rows[kh][0, 0, pw, dw:dw + ow, :]
            part = jnp.dot(x_tap, w_ref[t], preferred_element_type=jnp.float32)
            if t == 0:
                acc_ref[...] = part
            else:
                acc_ref[...] += part

        res = (acc_ref[...] + b_ref[...]).astype(o_ref.dtype)   # bf16 (OW, tn)
        o_ref[0, 0, :, :] = res

        # Statistics are computed from the bf16-rounded values (what the
        # normalize pass will read back), accumulated in f32.
        rf = res.astype(jnp.float32)

        @pl.when(oi == 0)
        def _():
            ssum_ref[...] = jnp.zeros_like(ssum_ref)
            ssq_ref[...] = jnp.zeros_like(ssq_ref)

        ssum_ref[...] += jnp.sum(rf, axis=0, keepdims=True)
        ssq_ref[...] += jnp.sum(rf * rf, axis=0, keepdims=True)

        @pl.when(oi == pl.num_programs(2) - 1)
        def _():
            inv = 1.0 / float(oh_total * ow)
            mean = ssum_ref[...] * inv                               # (1, tn)
            var = jnp.maximum(ssq_ref[...] * inv - mean * mean, 0.0)
            st_ref[0, 0:1, :] = mean
            st_ref[0, 1:2, :] = lax.rsqrt(var + eps)

    return kernel


def _norm_lrelu_kernel(x_ref, s_ref, o_ref):
    """Normalize with precomputed (mean, rstd) + LeakyReLU(0.2), spatially tiled."""
    x = x_ref[0].astype(jnp.float32)            # (toh, OW, tc)
    st = s_ref[0]                               # (2, tc) f32
    mean = st[0:1, :][None]                     # (1, 1, tc)
    rstd = st[1:2, :][None]                     # (1, 1, tc)
    y = (x - mean) * rstd
    o_ref[0] = jnp.where(y >= 0, y, NEG_SLOPE * y).astype(o_ref.dtype)


# ------------------------------ Pallas wrappers ----------------------------- #

def _conv_stats(xw, wt, bp, stride, oh, ow, tn):
    """xw: (N, Hp, stride, Wq, Cin8) bf16 (W-phase-split padded input),
    wt: (16, Cin8, Cp) bf16, bp: (1, Cp) f32.

    Returns (conv_out bf16 (N, OH, OW, Cp), stats f32 (N, 2, Cp))."""
    n, hp, s, wq, cin8 = xw.shape
    cp = wt.shape[2]
    cj = cp // tn

    def row_spec(kh):
        return pl.BlockSpec(
            (1, 1, s, wq, cin8),
            lambda ni, j, oi, kh=kh: (ni, oi * stride + kh, 0, 0, 0))

    ce = pl.CostEstimate(
        flops=2 * n * oh * ow * cp * cin8 * KSIZE * KSIZE,
        transcendentals=0,
        bytes_accessed=int(xw.size * 2 * cj + wt.size * 2 * n
                           + n * oh * ow * cp * 2 + n * 2 * cp * 4))

    return pl.pallas_call(
        _make_conv_stats_kernel(stride, oh, ow),
        out_shape=(jax.ShapeDtypeStruct((n, oh, ow, cp), jnp.bfloat16),
                   jax.ShapeDtypeStruct((n, 2, cp), jnp.float32)),
        grid=(n, cj, oh),
        in_specs=[row_spec(0), row_spec(1), row_spec(2), row_spec(3),
                  pl.BlockSpec((KSIZE * KSIZE, cin8, tn),
                               lambda ni, j, oi: (0, 0, j)),
                  pl.BlockSpec((1, tn), lambda ni, j, oi: (0, j))],
        out_specs=(pl.BlockSpec((1, 1, ow, tn), lambda ni, j, oi: (ni, oi, 0, j)),
                   pl.BlockSpec((1, 2, tn), lambda ni, j, oi: (ni, 0, j))),
        scratch_shapes=[pltpu.VMEM((ow, tn), jnp.float32),
                        pltpu.VMEM((1, tn), jnp.float32),
                        pltpu.VMEM((1, tn), jnp.float32)],
        compiler_params=pltpu.CompilerParams(
            dimension_semantics=("parallel", "parallel", "arbitrary")),
        cost_estimate=ce,
    )(xw, xw, xw, xw, wt, bp)


def _normalize_lrelu(y, stats, out_dtype):
    """y: (N, OH, OW, Cp) bf16, stats: (N, 2, Cp) f32 -> normalized out_dtype."""
    n, oh, ow, cp = y.shape
    tc = 256 if cp % 256 == 0 else 128

    # Spatial row tile: cap the block footprint (~1 MiB bf16) and pick a tile
    # that divides OH exactly so no boundary blocks are needed.
    max_rows = max(1, (1 << 20) // max(1, ow * tc * 2))
    toh = 1
    for d in range(min(oh, max_rows), 0, -1):
        if oh % d == 0:
            toh = d
            break

    return pl.pallas_call(
        _norm_lrelu_kernel,
        out_shape=jax.ShapeDtypeStruct((n, oh, ow, cp), out_dtype),
        grid=(n, cp // tc, oh // toh),
        in_specs=[pl.BlockSpec((1, toh, ow, tc), lambda ni, c, t: (ni, t, 0, c)),
                  pl.BlockSpec((1, 2, tc), lambda ni, c, t: (ni, 0, c))],
        out_specs=pl.BlockSpec((1, toh, ow, tc), lambda ni, c, t: (ni, t, 0, c)),
        compiler_params=pltpu.CompilerParams(
            dimension_semantics=("parallel", "parallel", "parallel")),
    )(y, stats)


# ------------------------------- JAX glue ----------------------------------- #

def dis_block_forward(x, w, b, stride):
    """Dis_Block forward.  x: (N, Cin, H, W) f32, w: (Cout, Cin, 4, 4), b: (Cout,)."""
    n, cin, h, wd = x.shape
    cout = w.shape[0]
    hp, wp = h + 2, wd + 2
    oh = (hp - KSIZE) // stride + 1
    ow = (wp - KSIZE) // stride + 1
    cin8 = _round_up(cin, 8)
    cp = _round_up(cout, 128)
    tn = 256 if cp % 256 == 0 else 128

    # NCHW -> NHWC (channels on lanes), bf16, reflect pad, pad Cin to mult of 8.
    xh = x.transpose(0, 2, 3, 1).astype(jnp.bfloat16)
    xh = jnp.pad(xh, ((0, 0), (1, 1), (1, 1), (0, 0)), mode="reflect")
    xh = jnp.pad(xh, ((0, 0), (0, 0), (0, 0), (0, cin8 - cin)))

    # W-stride phase split: one cheap XLA pass so every tap window seen by the
    # kernel is a contiguous static slice (no im2col, no strided in-kernel loads).
    phases = [xh[:, :, pw::stride, :] for pw in range(stride)]
    wq = max(p.shape[2] for p in phases)
    phases = [jnp.pad(p, ((0, 0), (0, 0), (0, wq - p.shape[2]), (0, 0)))
              for p in phases]
    xw = jnp.stack(phases, axis=2)                    # (N, Hp, stride, Wq, Cin8)

    # Weights as (tap, Cin8, Cout_p) bf16, tap index t = kh*4 + kw.
    wt = w.transpose(2, 3, 1, 0).reshape(KSIZE * KSIZE, cin, cout)
    wt = jnp.pad(wt, ((0, 0), (0, cin8 - cin), (0, cp - cout))).astype(jnp.bfloat16)
    bp = jnp.pad(b.astype(jnp.float32), (0, cp - cout)).reshape(1, cp)

    y, stats = _conv_stats(xw, wt, bp, stride, oh, ow, tn)   # bf16 conv + f32 stats
    z = _normalize_lrelu(y, stats, jnp.float32)              # (N, OH, OW, Cp)

    # TODO(synk): when chaining Dis_Blocks, keep activations NHWC between blocks
    # and drop this boundary transpose; it is kept to match the PyTorch module.
    return z[..., :cout].transpose(0, 3, 1, 2)


# -------------------------------- reference --------------------------------- #

def _reference(x, w, b, stride):
    # Pure-JAX reference mirroring the kernel's precision choices:
    # bf16 operands, f32 conv accumulation, bf16 storage of the conv output,
    # f32 instance norm (biased var, eps=1e-5) + LeakyReLU(0.2).
    xb = x.astype(jnp.bfloat16).astype(jnp.float32)
    wb = w.astype(jnp.bfloat16).astype(jnp.float32)
    xp = jnp.pad(xb, ((0, 0), (0, 0), (1, 1), (1, 1)), mode="reflect")
    y = lax.conv_general_dilated(
        xp, wb, window_strides=(stride, stride), padding="VALID",
        dimension_numbers=("NCHW", "OIHW", "NCHW"),
        preferred_element_type=jnp.float32)
    y = y + b.reshape(1, -1, 1, 1)
    y = y.astype(jnp.bfloat16).astype(jnp.float32)
    mean = y.mean(axis=(2, 3), keepdims=True)
    var = jnp.mean(jnp.square(y - mean), axis=(2, 3), keepdims=True)
    yn = (y - mean) * lax.rsqrt(var + EPS)
    return jnp.where(yn >= 0, yn, NEG_SLOPE * yn)


if __name__ == "__main__":
    key = jax.random.PRNGKey(0)
    kx, kw1, kb1, kw2, kb2, kw3, kb3 = jax.random.split(key, 7)

    def conv_init(kw_key, kb_key, ci, co):
        s = 1.0 / float(ci * KSIZE * KSIZE) ** 0.5
        w = jax.random.uniform(kw_key, (co, ci, KSIZE, KSIZE), jnp.float32, -s, s)
        b = jax.random.uniform(kb_key, (co,), jnp.float32, -s, s)
        return w, b

    # Chain three Dis_Blocks the way the CycleGAN discriminator does, at small shapes:
    #   (2,3,16,16) --3->64,s2--> (2,64,8,8) --64->128,s2--> (2,128,4,4) --128->256,s1--> (2,256,3,3)
    x = jax.random.normal(kx, (2, 3, 16, 16), jnp.float32)
    w1, b1 = conv_init(kw1, kb1, 3, 64)      # exercises Cin=3->8 pad and Cout=64->128 pad
    w2, b2 = conv_init(kw2, kb2, 64, 128)
    w3, b3 = conv_init(kw3, kb3, 128, 256)   # stride 1, odd OH/OW

    fwd = jax.jit(dis_block_forward, static_argnames=("stride",))
    y1 = fwd(x, w1, b1, stride=2)
    y2 = fwd(y1, w2, b2, stride=2)
    y3 = fwd(y2, w3, b3, stride=1)
    jax.block_until_ready(y3)

    assert y1.shape == (2, 64, 8, 8), y1.shape
    assert y2.shape == (2, 128, 4, 4), y2.shape
    assert y3.shape == (2, 256, 3, 3), y3.shape

    # Per-block correctness vs pure-JAX reference (each block checked on its own input).
    r1 = _reference(x, w1, b1, 2)
    r2 = _reference(y1, w2, b2, 2)
    r3 = _reference(y2, w3, b3, 1)
    e1 = float(jnp.max(jnp.abs(y1 - r1)))
    e2 = float(jnp.max(jnp.abs(y2 - r2)))
    e3 = float(jnp.max(jnp.abs(y3 - r3)))
    assert e1 < 1e-2 and e2 < 1e-2 and e3 < 1e-2, (e1, e2, e3)

    print("KERNEL_OK")
</pallas_src>

<mosaic_0001>
module attributes {stable_mosaic.version = 11 : i64} {
  func.func @_norm_lrelu_kernel(%arg0: i32, %arg1: i32, %arg2: i32, %arg3: memref<1x8x8x128xbf16, #tpu.memory_space<vmem>>, %arg4: memref<1x2x128xf32, #tpu.memory_space<vmem>>, %arg5: memref<1x8x8x128xf32, #tpu.memory_space<vmem>>) attributes {dimension_semantics = [#tpu.dimension_semantics<parallel>, #tpu.dimension_semantics<parallel>, #tpu.dimension_semantics<parallel>], iteration_bounds = array<i64: 2, 1, 1>, scalar_prefetch = 0 : i64, scratch_operands = 0 : i64, tpu.core_type = #tpu.core_type<tc>, window_params = [{transform_indices = @transform_0, window_bounds = array<i64: 1, 8, 8, 128>}, {transform_indices = @transform_1, window_bounds = array<i64: 1, 2, 128>}, {transform_indices = @transform_2, window_bounds = array<i64: 1, 8, 8, 128>}]} {
    %c0 = arith.constant 0 : index
    %c0_0 = arith.constant 0 : index
    %c0_1 = arith.constant 0 : index
    %c0_2 = arith.constant 0 : index
    %0 = vector.load %arg3[%c0, %c0_0, %c0_1, %c0_2] : memref<1x8x8x128xbf16, #tpu.memory_space<vmem>>, vector<1x8x8x128xbf16>
    %1 = vector.shape_cast %0 : vector<1x8x8x128xbf16> to vector<8x8x128xbf16>
    %2 = arith.extf %1 : vector<8x8x128xbf16> to vector<8x8x128xf32>
    %c0_3 = arith.constant 0 : index
    %c0_4 = arith.constant 0 : index
    %c0_5 = arith.constant 0 : index
    %3 = vector.load %arg4[%c0_3, %c0_4, %c0_5] : memref<1x2x128xf32, #tpu.memory_space<vmem>>, vector<1x2x128xf32>
    %4 = vector.shape_cast %3 : vector<1x2x128xf32> to vector<2x128xf32>
    %5 = vector.extract_strided_slice %4 {offsets = [0, 0], sizes = [1, 128], strides = [1, 1]} : vector<2x128xf32> to vector<1x128xf32>
    %6 = vector.shape_cast %5 : vector<1x128xf32> to vector<1x1x128xf32>
    %7 = vector.extract_strided_slice %4 {offsets = [1, 0], sizes = [1, 128], strides = [1, 1]} : vector<2x128xf32> to vector<1x128xf32>
    %8 = vector.shape_cast %7 : vector<1x128xf32> to vector<1x1x128xf32>
    %9 = vector.broadcast %6 : vector<1x1x128xf32> to vector<8x8x128xf32>
    %10 = arith.subf %2, %9 : vector<8x8x128xf32>
    %11 = vector.broadcast %8 : vector<1x1x128xf32> to vector<8x8x128xf32>
    %12 = arith.mulf %10, %11 : vector<8x8x128xf32>
    %cst = arith.constant 0.000000e+00 : f32
    %13 = vector.broadcast %cst : f32 to vector<8x8x128xf32>
    %14 = arith.cmpf oge, %12, %13 : vector<8x8x128xf32>
    %cst_6 = arith.constant 2.000000e-01 : f32
    %15 = vector.broadcast %cst_6 : f32 to vector<8x8x128xf32>
    %16 = arith.mulf %15, %12 : vector<8x8x128xf32>
    %17 = arith.select %14, %12, %16 : vector<8x8x128xi1>, vector<8x8x128xf32>
    %c0_7 = arith.constant 0 : index
    %c0_8 = arith.constant 0 : index
    %c0_9 = arith.constant 0 : index
    %c0_10 = arith.constant 0 : index
    %18 = vector.load %arg5[%c0_7, %c0_8, %c0_9, %c0_10] : memref<1x8x8x128xf32, #tpu.memory_space<vmem>>, vector<1x8x8x128xf32>
    %19 = vector.shape_cast %18 : vector<1x8x8x128xf32> to vector<8x8x128xf32>
    %20 = vector.shape_cast %17 : vector<8x8x128xf32> to vector<1x8x8x128xf32>
    tpu.vector_store %arg5[%c0_7, %c0_8, %c0_9, %c0_10], %20 {strides = array<i32>} : memref<1x8x8x128xf32, #tpu.memory_space<vmem>>, vector<1x8x8x128xf32>,
    return
  }
  func.func @transform_0(%arg0: i32, %arg1: i32, %arg2: i32) -> (i32, i32, i32, i32) {
    %c0_i32 = arith.constant 0 : i32
    %c0_i32_0 = arith.constant 0 : i32
    return %arg0, %arg2, %c0_i32, %arg1 : i32, i32, i32, i32
  }
  func.func @transform_1(%arg0: i32, %arg1: i32, %arg2: i32) -> (i32, i32, i32) {
    %c0_i32 = arith.constant 0 : i32
    %c0_i32_0 = arith.constant 0 : i32
    return %arg0, %c0_i32, %arg1 : i32, i32, i32
  }
  func.func @transform_2(%arg0: i32, %arg1: i32, %arg2: i32) -> (i32, i32, i32, i32) {
    %c0_i32 = arith.constant 0 : i32
    %c0_i32_0 = arith.constant 0 : i32
    return %arg0, %arg2, %c0_i32, %arg1 : i32, i32, i32, i32
  }
}

module attributes {stable_mosaic.version = 11 : i64} {
  func.func @kernel(%arg0: i32, %arg1: i32, %arg2: i32, %arg3: memref<1x1x2x9x8xbf16, #tpu.memory_space<vmem>>, %arg4: memref<1x1x2x9x8xbf16, #tpu.memory_space<vmem>>, %arg5: memref<1x1x2x9x8xbf16, #tpu.memory_space<vmem>>, %arg6: memref<1x1x2x9x8xbf16, #tpu.memory_space<vmem>>, %arg7: memref<16x8x128xbf16, #tpu.memory_space<vmem>>, %arg8: memref<1x128xf32, #tpu.memory_space<vmem>>, %arg9: memref<1x1x8x128xbf16, #tpu.memory_space<vmem>>, %arg10: memref<1x2x128xf32, #tpu.memory_space<vmem>>, %arg11: memref<8x128xf32, #tpu.memory_space<vmem>>, %arg12: memref<1x128xf32, #tpu.memory_space<vmem>>, %arg13: memref<1x128xf32, #tpu.memory_space<vmem>>) attributes {dimension_semantics = [#tpu.dimension_semantics<parallel>, #tpu.dimension_semantics<parallel>, #tpu.dimension_semantics<arbitrary>], iteration_bounds = array<i64: 2, 1, 8>, scalar_prefetch = 0 : i64, scratch_operands = 3 : i64, tpu.core_type = #tpu.core_type<tc>, window_params = [{transform_indices = @transform_0, window_bounds = array<i64: 1, 1, 2, 9, 8>}, {transform_indices = @transform_1, window_bounds = array<i64: 1, 1, 2, 9, 8>}, {transform_indices = @transform_2, window_bounds = array<i64: 1, 1, 2, 9, 8>}, {transform_indices = @transform_3, window_bounds = array<i64: 1, 1, 2, 9, 8>}, {transform_indices = @transform_4, window_bounds = array<i64: 16, 8, 128>}, {transform_indices = @transform_5, window_bounds = array<i64: 1, 128>}, {transform_indices = @transform_6, window_bounds = array<i64: 1, 1, 8, 128>}, {transform_indices = @transform_7, window_bounds = array<i64: 1, 2, 128>}]} {
    %c0 = arith.constant 0 : index
    %c0_0 = arith.constant 0 : index
    %c0_1 = arith.constant 0 : index
    %c0_2 = arith.constant 0 : index
    %c0_3 = arith.constant 0 : index
    %0 = vector.load %arg3[%c0, %c0_0, %c0_1, %c0_2, %c0_3] : memref<1x1x2x9x8xbf16, #tpu.memory_space<vmem>>, vector<1x1x1x8x8xbf16>
    %1 = vector.shape_cast %0 : vector<1x1x1x8x8xbf16> to vector<8x8xbf16>
    %c0_4 = arith.constant 0 : index
    %c0_5 = arith.constant 0 : index
    %c0_6 = arith.constant 0 : index
    %2 = vector.load %arg7[%c0_4, %c0_5, %c0_6] : memref<16x8x128xbf16, #tpu.memory_space<vmem>>, vector<1x8x128xbf16>
    %3 = vector.shape_cast %2 : vector<1x8x128xbf16> to vector<8x128xbf16>
    %cst = arith.constant dense<0.000000e+00> : vector<8x128xf32>
    %4 = tpu.matmul %1, %3, %cst {dimension_numbers = #tpu.dot_dimension_numbers<[1], [0], [0], [1], [0, 0, 1, 1], [], []>} : vector<8x8xbf16>, vector<8x128xbf16>, vector<8x128xf32> -> vector<8x128xf32>
    %c0_7 = arith.constant 0 : index
    %c0_8 = arith.constant 0 : index
    %5 = vector.load %arg11[%c0_7, %c0_8] : memref<8x128xf32, #tpu.memory_space<vmem>>, vector<8x128xf32>
    tpu.vector_store %arg11[%c0_7, %c0_8], %4 {strides = array<i32>} : memref<8x128xf32, #tpu.memory_space<vmem>>, vector<8x128xf32>,
    %c0_9 = arith.constant 0 : index
    %c0_10 = arith.constant 0 : index
    %c1 = arith.constant 1 : index
    %c0_11 = arith.constant 0 : index
    %c0_12 = arith.constant 0 : index
    %6 = vector.load %arg3[%c0_9, %c0_10, %c1, %c0_11, %c0_12] : memref<1x1x2x9x8xbf16, #tpu.memory_space<vmem>>, vector<1x1x1x8x8xbf16>
    %7 = vector.shape_cast %6 : vector<1x1x1x8x8xbf16> to vector<8x8xbf16>
    %c1_13 = arith.constant 1 : index
    %c0_14 = arith.constant 0 : index
    %c0_15 = arith.constant 0 : index
    %8 = vector.load %arg7[%c1_13, %c0_14, %c0_15] : memref<16x8x128xbf16, #tpu.memory_space<vmem>>, vector<1x8x128xbf16>
    %9 = vector.shape_cast %8 : vector<1x8x128xbf16> to vector<8x128xbf16>
    %cst_16 = arith.constant dense<0.000000e+00> : vector<8x128xf32>
    %10 = tpu.matmul %7, %9, %cst_16 {dimension_numbers = #tpu.dot_dimension_numbers<[1], [0], [0], [1], [0, 0, 1, 1], [], []>} : vector<8x8xbf16>, vector<8x128xbf16>, vector<8x128xf32> -> vector<8x128xf32>
    %c0_17 = arith.constant 0 : index
    %c0_18 = arith.constant 0 : index
    %11 = vector.load %arg11[%c0_17, %c0_18] : memref<8x128xf32, #tpu.memory_space<vmem>>, vector<8x128xf32>
    %12 = arith.addf %11, %10 : vector<8x128xf32>
    %c0_19 = arith.constant 0 : index
    %c0_20 = arith.constant 0 : index
    %13 = vector.load %arg11[%c0_19, %c0_20] : memref<8x128xf32, #tpu.memory_space<vmem>>, vector<8x128xf32>
    tpu.vector_store %arg11[%c0_19, %c0_20], %12 {strides = array<i32>} : memref<8x128xf32, #tpu.memory_space<vmem>>, vector<8x128xf32>,
    %c0_21 = arith.constant 0 : index
    %c0_22 = arith.constant 0 : index
    %c0_23 = arith.constant 0 : index
    %c1_24 = arith.constant 1 : index
    %c0_25 = arith.constant 0 : index
    %14 = vector.load %arg3[%c0_21, %c0_22, %c0_23, %c1_24, %c0_25] : memref<1x1x2x9x8xbf16, #tpu.memory_space<vmem>>, vector<1x1x1x8x8xbf16>
    %15 = vector.shape_cast %14 : vector<1x1x1x8x8xbf16> to vector<8x8xbf16>
    %c2 = arith.constant 2 : index
    %c0_26 = arith.constant 0 : index
    %c0_27 = arith.constant 0 : index
    %16 = vector.load %arg7[%c2, %c0_26, %c0_27] : memref<16x8x128xbf16, #tpu.memory_space<vmem>>, vector<1x8x128xbf16>
    %17 = vector.shape_cast %16 : vector<1x8x128xbf16> to vector<8x128xbf16>
    %cst_28 = arith.constant dense<0.000000e+00> : vector<8x128xf32>
    %18 = tpu.matmul %15, %17, %cst_28 {dimension_numbers = #tpu.dot_dimension_numbers<[1], [0], [0], [1], [0, 0, 1, 1], [], []>} : vector<8x8xbf16>, vector<8x128xbf16>, vector<8x128xf32> -> vector<8x128xf32>
    %c0_29 = arith.constant 0 : index
    %c0_30 = arith.constant 0 : index
    %19 = vector.load %arg11[%c0_29, %c0_30] : memref<8x128xf32, #tpu.memory_space<vmem>>, vector<8x128xf32>
    %20 = arith.addf %19, %18 : vector<8x128xf32>
    %c0_31 = arith.constant 0 : index
    %c0_32 = arith.constant 0 : index
    %21 = vector.load %arg11[%c0_31, %c0_32] : memref<8x128xf32, #tpu.memory_space<vmem>>, vector<8x128xf32>
    tpu.vector_store %arg11[%c0_31, %c0_32], %20 {strides = array<i32>} : memref<8x128xf32, #tpu.memory_space<vmem>>, vector<8x128xf32>,
    %c0_33 = arith.constant 0 : index
    %c0_34 = arith.constant 0 : index
    %c1_35 = arith.constant 1 : index
    %c1_36 = arith.constant 1 : index
    %c0_37 = arith.constant 0 : index
    %22 = vector.load %arg3[%c0_33, %c0_34, %c1_35, %c1_36, %c0_37] : memref<1x1x2x9x8xbf16, #tpu.memory_space<vmem>>, vector<1x1x1x8x8xbf16>
    %23 = vector.shape_cast %22 : vector<1x1x1x8x8xbf16> to vector<8x8xbf16>
    %c3 = arith.constant 3 : index
    %c0_38 = arith.constant 0 : index
    %c0_39 = arith.constant 0 : index
    %24 = vector.load %arg7[%c3, %c0_38, %c0_39] : memref<16x8x128xbf16, #tpu.memory_space<vmem>>, vector<1x8x128xbf16>
    %25 = vector.shape_cast %24 : vector<1x8x128xbf16> to vector<8x128xbf16>
    %cst_40 = arith.constant dense<0.000000e+00> : vector<8x128xf32>
    %26 = tpu.matmul %23, %25, %cst_40 {dimension_numbers = #tpu.dot_dimension_numbers<[1], [0], [0], [1], [0, 0, 1, 1], [], []>} : vector<8x8xbf16>, vector<8x128xbf16>, vector<8x128xf32> -> vector<8x128xf32>
    %c0_41 = arith.constant 0 : index
    %c0_42 = arith.constant 0 : index
    %27 = vector.load %arg11[%c0_41, %c0_42] : memref<8x128xf32, #tpu.memory_space<vmem>>, vector<8x128xf32>
    %28 = arith.addf %27, %26 : vector<8x128xf32>
    %c0_43 = arith.constant 0 : index
    %c0_44 = arith.constant 0 : index
    %29 = vector.load %arg11[%c0_43, %c0_44] : memref<8x128xf32, #tpu.memory_space<vmem>>, vector<8x128xf32>
    tpu.vector_store %arg11[%c0_43, %c0_44], %28 {strides = array<i32>} : memref<8x128xf32, #tpu.memory_space<vmem>>, vector<8x128xf32>,
    %c0_45 = arith.constant 0 : index
    %c0_46 = arith.constant 0 : index
    %c0_47 = arith.constant 0 : index
    %c0_48 = arith.constant 0 : index
    %c0_49 = arith.constant 0 : index
    %30 = vector.load %arg4[%c0_45, %c0_46, %c0_47, %c0_48, %c0_49] : memref<1x1x2x9x8xbf16, #tpu.memory_space<vmem>>, vector<1x1x1x8x8xbf16>
    %31 = vector.shape_cast %30 : vector<1x1x1x8x8xbf16> to vector<8x8xbf16>
    %c4 = arith.constant 4 : index
    %c0_50 = arith.constant 0 : index
    %c0_51 = arith.constant 0 : index
    %32 = vector.load %arg7[%c4, %c0_50, %c0_51] : memref<16x8x128xbf16, #tpu.memory_space<vmem>>, vector<1x8x128xbf16>
    %33 = vector.shape_cast %32 : vector<1x8x128xbf16> to vector<8x128xbf16>
    %cst_52 = arith.constant dense<0.000000e+00> : vector<8x128xf32>
    %34 = tpu.matmul %31, %33, %cst_52 {dimension_numbers = #tpu.dot_dimension_numbers<[1], [0], [0], [1], [0, 0, 1, 1], [], []>} : vector<8x8xbf16>, vector<8x128xbf16>, vector<8x128xf32> -> vector<8x128xf32>
    %c0_53 = arith.constant 0 : index
    %c0_54 = arith.constant 0 : index
    %35 = vector.load %arg11[%c0_53, %c0_54] : memref<8x128xf32, #tpu.memory_space<vmem>>, vector<8x128xf32>
    %36 = arith.addf %35, %34 : vector<8x128xf32>
    %c0_55 = arith.constant 0 : index
    %c0_56 = arith.constant 0 : index
    %37 = vector.load %arg11[%c0_55, %c0_56] : memref<8x128xf32, #tpu.memory_space<vmem>>, vector<8x128xf32>
    tpu.vector_store %arg11[%c0_55, %c0_56], %36 {strides = array<i32>} : memref<8x128xf32, #tpu.memory_space<vmem>>, vector<8x128xf32>,
    %c0_57 = arith.constant 0 : index
    %c0_58 = arith.constant 0 : index
    %c1_59 = arith.constant 1 : index
    %c0_60 = arith.constant 0 : index
    %c0_61 = arith.constant 0 : index
    %38 = vector.load %arg4[%c0_57, %c0_58, %c1_59, %c0_60, %c0_61] : memref<1x1x2x9x8xbf16, #tpu.memory_space<vmem>>, vector<1x1x1x8x8xbf16>
    %39 = vector.shape_cast %38 : vector<1x1x1x8x8xbf16> to vector<8x8xbf16>
    %c5 = arith.constant 5 : index
    %c0_62 = arith.constant 0 : index
    %c0_63 = arith.constant 0 : index
    %40 = vector.load %arg7[%c5, %c0_62, %c0_63] : memref<16x8x128xbf16, #tpu.memory_space<vmem>>, vector<1x8x128xbf16>
    %41 = vector.shape_cast %40 : vector<1x8x128xbf16> to vector<8x128xbf16>
    %cst_64 = arith.constant dense<0.000000e+00> : vector<8x128xf32>
    %42 = tpu.matmul %39, %41, %cst_64 {dimension_numbers = #tpu.dot_dimension_numbers<[1], [0], [0], [1], [0, 0, 1, 1], [], []>} : vector<8x8xbf16>, vector<8x128xbf16>, vector<8x128xf32> -> vector<8x128xf32>
    %c0_65 = arith.constant 0 : index
    %c0_66 = arith.constant 0 : index
    %43 = vector.load %arg11[%c0_65, %c0_66] : memref<8x128xf32, #tpu.memory_space<vmem>>, vector<8x128xf32>
    %44 = arith.addf %43, %42 : vector<8x128xf32>
    %c0_67 = arith.constant 0 : index
    %c0_68 = arith.constant 0 : index
    %45 = vector.load %arg11[%c0_67, %c0_68] : memref<8x128xf32, #tpu.memory_space<vmem>>, vector<8x128xf32>
    tpu.vector_store %arg11[%c0_67, %c0_68], %44 {strides = array<i32>} : memref<8x128xf32, #tpu.memory_space<vmem>>, vector<8x128xf32>,
    %c0_69 = arith.constant 0 : index
    %c0_70 = arith.constant 0 : index
    %c0_71 = arith.constant 0 : index
    %c1_72 = arith.constant 1 : index
    %c0_73 = arith.constant 0 : index
    %46 = vector.load %arg4[%c0_69, %c0_70, %c0_71, %c1_72, %c0_73] : memref<1x1x2x9x8xbf16, #tpu.memory_space<vmem>>, vector<1x1x1x8x8xbf16>
    %47 = vector.shape_cast %46 : vector<1x1x1x8x8xbf16> to vector<8x8xbf16>
    %c6 = arith.constant 6 : index
    %c0_74 = arith.constant 0 : index
    %c0_75 = arith.constant 0 : index
    %48 = vector.load %arg7[%c6, %c0_74, %c0_75] : memref<16x8x128xbf16, #tpu.memory_space<vmem>>, vector<1x8x128xbf16>
    %49 = vector.shape_cast %48 : vector<1x8x128xbf16> to vector<8x128xbf16>
    %cst_76 = arith.constant dense<0.000000e+00> : vector<8x128xf32>
    %50 = tpu.matmul %47, %49, %cst_76 {dimension_numbers = #tpu.dot_dimension_numbers<[1], [0], [0], [1], [0, 0, 1, 1], [], []>} : vector<8x8xbf16>, vector<8x128xbf16>, vector<8x128xf32> -> vector<8x128xf32>
    %c0_77 = arith.constant 0 : index
    %c0_78 = arith.constant 0 : index
    %51 = vector.load %arg11[%c0_77, %c0_78] : memref<8x128xf32, #tpu.memory_space<vmem>>, vector<8x128xf32>
    %52 = arith.addf %51, %50 : vector<8x128xf32>
    %c0_79 = arith.constant 0 : index
    %c0_80 = arith.constant 0 : index
    %53 = vector.load %arg11[%c0_79, %c0_80] : memref<8x128xf32, #tpu.memory_space<vmem>>, vector<8x128xf32>
    tpu.vector_store %arg11[%c0_79, %c0_80], %52 {strides = array<i32>} : memref<8x128xf32, #tpu.memory_space<vmem>>, vector<8x128xf32>,
    %c0_81 = arith.constant 0 : index
    %c0_82 = arith.constant 0 : index
    %c1_83 = arith.constant 1 : index
    %c1_84 = arith.constant 1 : index
    %c0_85 = arith.constant 0 : index
    %54 = vector.load %arg4[%c0_81, %c0_82, %c1_83, %c1_84, %c0_85] : memref<1x1x2x9x8xbf16, #tpu.memory_space<vmem>>, vector<1x1x1x8x8xbf16>
    %55 = vector.shape_cast %54 : vector<1x1x1x8x8xbf16> to vector<8x8xbf16>
    %c7 = arith.constant 7 : index
    %c0_86 = arith.constant 0 : index
    %c0_87 = arith.constant 0 : index
    %56 = vector.load %arg7[%c7, %c0_86, %c0_87] : memref<16x8x128xbf16, #tpu.memory_space<vmem>>, vector<1x8x128xbf16>
    %57 = vector.shape_cast %56 : vector<1x8x128xbf16> to vector<8x128xbf16>
    %cst_88 = arith.constant dense<0.000000e+00> : vector<8x128xf32>
    %58 = tpu.matmul %55, %57, %cst_88 {dimension_numbers = #tpu.dot_dimension_numbers<[1], [0], [0], [1], [0, 0, 1, 1], [], []>} : vector<8x8xbf16>, vector<8x128xbf16>, vector<8x128xf32> -> vector<8x128xf32>
    %c0_89 = arith.constant 0 : index
    %c0_90 = arith.constant 0 : index
    %59 = vector.load %arg11[%c0_89, %c0_90] : memref<8x128xf32, #tpu.memory_space<vmem>>, vector<8x128xf32>
    %60 = arith.addf %59, %58 : vector<8x128xf32>
    %c0_91 = arith.constant 0 : index
    %c0_92 = arith.constant 0 : index
    %61 = vector.load %arg11[%c0_91, %c0_92] : memref<8x128xf32, #tpu.memory_space<vmem>>, vector<8x128xf32>
    tpu.vector_store %arg11[%c0_91, %c0_92], %60 {strides = array<i32>} : memref<8x128xf32, #tpu.memory_space<vmem>>, vector<8x128xf32>,
    %c0_93 = arith.constant 0 : index
    %c0_94 = arith.constant 0 : index
    %c0_95 = arith.constant 0 : index
    %c0_96 = arith.constant 0 : index
    %c0_97 = arith.constant 0 : index
    %62 = vector.load %arg5[%c0_93, %c0_94, %c0_95, %c0_96, %c0_97] : memref<1x1x2x9x8xbf16, #tpu.memory_space<vmem>>, vector<1x1x1x8x8xbf16>
    %63 = vector.shape_cast %62 : vector<1x1x1x8x8xbf16> to vector<8x8xbf16>
    %c8 = arith.constant 8 : index
    %c0_98 = arith.constant 0 : index
    %c0_99 = arith.constant 0 : index
    %64 = vector.load %arg7[%c8, %c0_98, %c0_99] : memref<16x8x128xbf16, #tpu.memory_space<vmem>>, vector<1x8x128xbf16>
    %65 = vector.shape_cast %64 : vector<1x8x128xbf16> to vector<8x128xbf16>
    %cst_100 = arith.constant dense<0.000000e+00> : vector<8x128xf32>
    %66 = tpu.matmul %63, %65, %cst_100 {dimension_numbers = #tpu.dot_dimension_numbers<[1], [0], [0], [1], [0, 0, 1, 1], [], []>} : vector<8x8xbf16>, vector<8x128xbf16>, vector<8x128xf32> -> vector<8x128xf32>
    %c0_101 = arith.constant 0 : index
    %c0_102 = arith.constant 0 : index
    %67 = vector.load %arg11[%c0_101, %c0_102] : memref<8x128xf32, #tpu.memory_space<vmem>>, vector<8x128xf32>
    %68 = arith.addf %67, %66 : vector<8x128xf32>
    %c0_103 = arith.constant 0 : index
    %c0_104 = arith.constant 0 : index
    %69 = vector.load %arg11[%c0_103, %c0_104] : memref<8x128xf32, #tpu.memory_space<vmem>>, vector<8x128xf32>
    tpu.vector_store %arg11[%c0_103, %c0_104], %68 {strides = array<i32>} : memref<8x128xf32, #tpu.memory_space<vmem>>, vector<8x128xf32>,
    %c0_105 = arith.constant 0 : index
    %c0_106 = arith.constant 0 : index
    %c1_107 = arith.constant 1 : index
    %c0_108 = arith.constant 0 : index
    %c0_109 = arith.constant 0 : index
    %70 = vector.load %arg5[%c0_105, %c0_106, %c1_107, %c0_108, %c0_109] : memref<1x1x2x9x8xbf16, #tpu.memory_space<vmem>>, vector<1x1x1x8x8xbf16>
    %71 = vector.shape_cast %70 : vector<1x1x1x8x8xbf16> to vector<8x8xbf16>
    %c9 = arith.constant 9 : index
    %c0_110 = arith.constant 0 : index
    %c0_111 = arith.constant 0 : index
    %72 = vector.load %arg7[%c9, %c0_110, %c0_111] : memref<16x8x128xbf16, #tpu.memory_space<vmem>>, vector<1x8x128xbf16>
    %73 = vector.shape_cast %72 : vector<1x8x128xbf16> to vector<8x128xbf16>
    %cst_112 = arith.constant dense<0.000000e+00> : vector<8x128xf32>
    %74 = tpu.matmul %71, %73, %cst_112 {dimension_numbers = #tpu.dot_dimension_numbers<[1], [0], [0], [1], [0, 0, 1, 1], [], []>} : vector<8x8xbf16>, vector<8x128xbf16>, vector<8x128xf32> -> vector<8x128xf32>
    %c0_113 = arith.constant 0 : index
    %c0_114 = arith.constant 0 : index
    %75 = vector.load %arg11[%c0_113, %c0_114] : memref<8x128xf32, #tpu.memory_space<vmem>>, vector<8x128xf32>
    %76 = arith.addf %75, %74 : vector<8x128xf32>
    %c0_115 = arith.constant 0 : index
    %c0_116 = arith.constant 0 : index
    %77 = vector.load %arg11[%c0_115, %c0_116] : memref<8x128xf32, #tpu.memory_space<vmem>>, vector<8x128xf32>
    tpu.vector_store %arg11[%c0_115, %c0_116], %76 {strides = array<i32>} : memref<8x128xf32, #tpu.memory_space<vmem>>, vector<8x128xf32>,
    %c0_117 = arith.constant 0 : index
    %c0_118 = arith.constant 0 : index
    %c0_119 = arith.constant 0 : index
    %c1_120 = arith.constant 1 : index
    %c0_121 = arith.constant 0 : index
    %78 = vector.load %arg5[%c0_117, %c0_118, %c0_119, %c1_120, %c0_121] : memref<1x1x2x9x8xbf16, #tpu.memory_space<vmem>>, vector<1x1x1x8x8xbf16>
    %79 = vector.shape_cast %78 : vector<1x1x1x8x8xbf16> to vector<8x8xbf16>
    %c10 = arith.constant 10 : index
    %c0_122 = arith.constant 0 : index
    %c0_123 = arith.constant 0 : index
    %80 = vector.load %arg7[%c10, %c0_122, %c0_123] : memref<16x8x128xbf16, #tpu.memory_space<vmem>>, vector<1x8x128xbf16>
    %81 = vector.shape_cast %80 : vector<1x8x128xbf16> to vector<8x128xbf16>
    %cst_124 = arith.constant dense<0.000000e+00> : vector<8x128xf32>
    %82 = tpu.matmul %79, %81, %cst_124 {dimension_numbers = #tpu.dot_dimension_numbers<[1], [0], [0], [1], [0, 0, 1, 1], [], []>} : vector<8x8xbf16>, vector<8x128xbf16>, vector<8x128xf32> -> vector<8x128xf32>
    %c0_125 = arith.constant 0 : index
    %c0_126 = arith.constant 0 : index
    %83 = vector.load %arg11[%c0_125, %c0_126] : memref<8x128xf32, #tpu.memory_space<vmem>>, vector<8x128xf32>
    %84 = arith.addf %83, %82 : vector<8x128xf32>
    %c0_127 = arith.constant 0 : index
    %c0_128 = arith.constant 0 : index
    %85 = vector.load %arg11[%c0_127, %c0_128] : memref<8x128xf32, #tpu.memory_space<vmem>>, vector<8x128xf32>
    tpu.vector_store %arg11[%c0_127, %c0_128], %84 {strides = array<i32>} : memref<8x128xf32, #tpu.memory_space<vmem>>, vector<8x128xf32>,
    %c0_129 = arith.constant 0 : index
    %c0_130 = arith.constant 0 : index
    %c1_131 = arith.constant 1 : index
    %c1_132 = arith.constant 1 : index
    %c0_133 = arith.constant 0 : index
    %86 = vector.load %arg5[%c0_129, %c0_130, %c1_131, %c1_132, %c0_133] : memref<1x1x2x9x8xbf16, #tpu.memory_space<vmem>>, vector<1x1x1x8x8xbf16>
    %87 = vector.shape_cast %86 : vector<1x1x1x8x8xbf16> to vector<8x8xbf16>
    %c11 = arith.constant 11 : index
    %c0_134 = arith.constant 0 : index
    %c0_135 = arith.constant 0 : index
    %88 = vector.load %arg7[%c11, %c0_134, %c0_135] : memref<16x8x128xbf16, #tpu.memory_space<vmem>>, vector<1x8x128xbf16>
    %89 = vector.shape_cast %88 : vector<1x8x128xbf16> to vector<8x128xbf16>
    %cst_136 = arith.constant dense<0.000000e+00> : vector<8x128xf32>
    %90 = tpu.matmul %87, %89, %cst_136 {dimension_numbers = #tpu.dot_dimension_numbers<[1], [0], [0], [1], [0, 0, 1, 1], [], []>} : vector<8x8xbf16>, vector<8x128xbf16>, vector<8x128xf32> -> vector<8x128xf32>
    %c0_137 = arith.constant 0 : index
    %c0_138 = arith.constant 0 : index
    %91 = vector.load %arg11[%c0_137, %c0_138] : memref<8x128xf32, #tpu.memory_space<vmem>>, vector<8x128xf32>
    %92 = arith.addf %91, %90 : vector<8x128xf32>
    %c0_139 = arith.constant 0 : index
    %c0_140 = arith.constant 0 : index
    %93 = vector.load %arg11[%c0_139, %c0_140] : memref<8x128xf32, #tpu.memory_space<vmem>>, vector<8x128xf32>
    tpu.vector_store %arg11[%c0_139, %c0_140], %92 {strides = array<i32>} : memref<8x128xf32, #tpu.memory_space<vmem>>, vector<8x128xf32>,
    %c0_141 = arith.constant 0 : index
    %c0_142 = arith.constant 0 : index
    %c0_143 = arith.constant 0 : index
    %c0_144 = arith.constant 0 : index
    %c0_145 = arith.constant 0 : index
    %94 = vector.load %arg6[%c0_141, %c0_142, %c0_143, %c0_144, %c0_145] : memref<1x1x2x9x8xbf16, #tpu.memory_space<vmem>>, vector<1x1x1x8x8xbf16>
    %95 = vector.shape_cast %94 : vector<1x1x1x8x8xbf16> to vector<8x8xbf16>
    %c12 = arith.constant 12 : index
    %c0_146 = arith.constant 0 : index
    %c0_147 = arith.constant 0 : index
    %96 = vector.load %arg7[%c12, %c0_146, %c0_147] : memref<16x8x128xbf16, #tpu.memory_space<vmem>>, vector<1x8x128xbf16>
    %97 = vector.shape_cast %96 : vector<1x8x128xbf16> to vector<8x128xbf16>
    %cst_148 = arith.constant dense<0.000000e+00> : vector<8x128xf32>
    %98 = tpu.matmul %95, %97, %cst_148 {dimension_numbers = #tpu.dot_dimension_numbers<[1], [0], [0], [1], [0, 0, 1, 1], [], []>} : vector<8x8xbf16>, vector<8x128xbf16>, vector<8x128xf32> -> vector<8x128xf32>
    %c0_149 = arith.constant 0 : index
    %c0_150 = arith.constant 0 : index
    %99 = vector.load %arg11[%c0_149, %c0_150] : memref<8x128xf32, #tpu.memory_space<vmem>>, vector<8x128xf32>
    %100 = arith.addf %99, %98 : vector<8x128xf32>
    %c0_151 = arith.constant 0 : index
    %c0_152 = arith.constant 0 : index
    %101 = vector.load %arg11[%c0_151, %c0_152] : memref<8x128xf32, #tpu.memory_space<vmem>>, vector<8x128xf32>
    tpu.vector_store %arg11[%c0_151, %c0_152], %100 {strides = array<i32>} : memref<8x128xf32, #tpu.memory_space<vmem>>, vector<8x128xf32>,
    %c0_153 = arith.constant 0 : index
    %c0_154 = arith.constant 0 : index
    %c1_155 = arith.constant 1 : index
    %c0_156 = arith.constant 0 : index
    %c0_157 = arith.constant 0 : index
    %102 = vector.load %arg6[%c0_153, %c0_154, %c1_155, %c0_156, %c0_157] : memref<1x1x2x9x8xbf16, #tpu.memory_space<vmem>>, vector<1x1x1x8x8xbf16>
    %103 = vector.shape_cast %102 : vector<1x1x1x8x8xbf16> to vector<8x8xbf16>
    %c13 = arith.constant 13 : index
    %c0_158 = arith.constant 0 : index
    %c0_159 = arith.constant 0 : index
    %104 = vector.load %arg7[%c13, %c0_158, %c0_159] : memref<16x8x128xbf16, #tpu.memory_space<vmem>>, vector<1x8x128xbf16>
    %105 = vector.shape_cast %104 : vector<1x8x128xbf16> to vector<8x128xbf16>
    %cst_160 = arith.constant dense<0.000000e+00> : vector<8x128xf32>
    %106 = tpu.matmul %103, %105, %cst_160 {dimension_numbers = #tpu.dot_dimension_numbers<[1], [0], [0], [1], [0, 0, 1, 1], [], []>} : vector<8x8xbf16>, vector<8x128xbf16>, vector<8x128xf32> -> vector<8x128xf32>
    %c0_161 = arith.constant 0 : index
    %c0_162 = arith.constant 0 : index
    %107 = vector.load %arg11[%c0_161, %c0_162] : memref<8x128xf32, #tpu.memory_space<vmem>>, vector<8x128xf32>
    %108 = arith.addf %107, %106 : vector<8x128xf32>
    %c0_163 = arith.constant 0 : index
    %c0_164 = arith.constant 0 : index
    %109 = vector.load %arg11[%c0_163, %c0_164] : memref<8x128xf32, #tpu.memory_space<vmem>>, vector<8x128xf32>
    tpu.vector_store %arg11[%c0_163, %c0_164], %108 {strides = array<i32>} : memref<8x128xf32, #tpu.memory_space<vmem>>, vector<8x128xf32>,
    %c0_165 = arith.constant 0 : index
    %c0_166 = arith.constant 0 : index
    %c0_167 = arith.constant 0 : index
    %c1_168 = arith.constant 1 : index
    %c0_169 = arith.constant 0 : index
    %110 = vector.load %arg6[%c0_165, %c0_166, %c0_167, %c1_168, %c0_169] : memref<1x1x2x9x8xbf16, #tpu.memory_space<vmem>>, vector<1x1x1x8x8xbf16>
    %111 = vector.shape_cast %110 : vector<1x1x1x8x8xbf16> to vector<8x8xbf16>
    %c14 = arith.constant 14 : index
    %c0_170 = arith.constant 0 : index
    %c0_171 = arith.constant 0 : index
    %112 = vector.load %arg7[%c14, %c0_170, %c0_171] : memref<16x8x128xbf16, #tpu.memory_space<vmem>>, vector<1x8x128xbf16>
    %113 = vector.shape_cast %112 : vector<1x8x128xbf16> to vector<8x128xbf16>
    %cst_172 = arith.constant dense<0.000000e+00> : vector<8x128xf32>
    %114 = tpu.matmul %111, %113, %cst_172 {dimension_numbers = #tpu.dot_dimension_numbers<[1], [0], [0], [1], [0, 0, 1, 1], [], []>} : vector<8x8xbf16>, vector<8x128xbf16>, vector<8x128xf32> -> vector<8x128xf32>
    %c0_173 = arith.constant 0 : index
    %c0_174 = arith.constant 0 : index
    %115 = vector.load %arg11[%c0_173, %c0_174] : memref<8x128xf32, #tpu.memory_space<vmem>>, vector<8x128xf32>
    %116 = arith.addf %115, %114 : vector<8x128xf32>
    %c0_175 = arith.constant 0 : index
    %c0_176 = arith.constant 0 : index
    %117 = vector.load %arg11[%c0_175, %c0_176] : memref<8x128xf32, #tpu.memory_space<vmem>>, vector<8x128xf32>
    tpu.vector_store %arg11[%c0_175, %c0_176], %116 {strides = array<i32>} : memref<8x128xf32, #tpu.memory_space<vmem>>, vector<8x128xf32>,
    %c0_177 = arith.constant 0 : index
    %c0_178 = arith.constant 0 : index
    %c1_179 = arith.constant 1 : index
    %c1_180 = arith.constant 1 : index
    %c0_181 = arith.constant 0 : index
    %118 = vector.load %arg6[%c0_177, %c0_178, %c1_179, %c1_180, %c0_181] : memref<1x1x2x9x8xbf16, #tpu.memory_space<vmem>>, vector<1x1x1x8x8xbf16>
    %119 = vector.shape_cast %118 : vector<1x1x1x8x8xbf16> to vector<8x8xbf16>
    %c15 = arith.constant 15 : index
    %c0_182 = arith.constant 0 : index
    %c0_183 = arith.constant 0 : index
    %120 = vector.load %arg7[%c15, %c0_182, %c0_183] : memref<16x8x128xbf16, #tpu.memory_space<vmem>>, vector<1x8x128xbf16>
    %121 = vector.shape_cast %120 : vector<1x8x128xbf16> to vector<8x128xbf16>
    %cst_184 = arith.constant dense<0.000000e+00> : vector<8x128xf32>
    %122 = tpu.matmul %119, %121, %cst_184 {dimension_numbers = #tpu.dot_dimension_numbers<[1], [0], [0], [1], [0, 0, 1, 1], [], []>} : vector<8x8xbf16>, vector<8x128xbf16>, vector<8x128xf32> -> vector<8x128xf32>
    %c0_185 = arith.constant 0 : index
    %c0_186 = arith.constant 0 : index
    %123 = vector.load %arg11[%c0_185, %c0_186] : memref<8x128xf32, #tpu.memory_space<vmem>>, vector<8x128xf32>
    %124 = arith.addf %123, %122 : vector<8x128xf32>
    %c0_187 = arith.constant 0 : index
    %c0_188 = arith.constant 0 : index
    %125 = vector.load %arg11[%c0_187, %c0_188] : memref<8x128xf32, #tpu.memory_space<vmem>>, vector<8x128xf32>
    tpu.vector_store %arg11[%c0_187, %c0_188], %124 {strides = array<i32>} : memref<8x128xf32, #tpu.memory_space<vmem>>, vector<8x128xf32>,
    %c0_189 = arith.constant 0 : index
    %c0_190 = arith.constant 0 : index
    %126 = vector.load %arg11[%c0_189, %c0_190] : memref<8x128xf32, #tpu.memory_space<vmem>>, vector<8x128xf32>
    %c0_191 = arith.constant 0 : index
    %c0_192 = arith.constant 0 : index
    %127 = vector.load %arg8[%c0_191, %c0_192] : memref<1x128xf32, #tpu.memory_space<vmem>>, vector<1x128xf32>
    %128 = vector.broadcast %127 : vector<1x128xf32> to vector<8x128xf32>
    %129 = arith.addf %126, %128 : vector<8x128xf32>
    %130 = arith.truncf %129 : vector<8x128xf32> to vector<8x128xbf16>
    %c0_193 = arith.constant 0 : index
    %c0_194 = arith.constant 0 : index
    %c0_195 = arith.constant 0 : index
    %c0_196 = arith.constant 0 : index
    %131 = vector.load %arg9[%c0_193, %c0_194, %c0_195, %c0_196] : memref<1x1x8x128xbf16, #tpu.memory_space<vmem>>, vector<1x1x8x128xbf16>
    %132 = vector.shape_cast %131 : vector<1x1x8x128xbf16> to vector<8x128xbf16>
    %133 = vector.shape_cast %130 : vector<8x128xbf16> to vector<1x1x8x128xbf16>
    tpu.vector_store %arg9[%c0_193, %c0_194, %c0_195, %c0_196], %133 {strides = array<i32>} : memref<1x1x8x128xbf16, #tpu.memory_space<vmem>>, vector<1x1x8x128xbf16>,
    %134 = arith.extf %130 : vector<8x128xbf16> to vector<8x128xf32>
    %c0_i32 = arith.constant 0 : i32
    %135 = arith.cmpi eq, %arg2, %c0_i32 : i32
    %136 = arith.extui %135 : i1 to i32
    %c0_i32_197 = arith.constant 0 : i32
    %137 = arith.cmpi ne, %136, %c0_i32_197 : i32
    scf.if %137 {
      %cst_209 = arith.constant 0.000000e+00 : f32
      %152 = vector.broadcast %cst_209 : f32 to vector<1x128xf32>
      %c0_210 = arith.constant 0 : index
      %c0_211 = arith.constant 0 : index
      %153 = vector.load %arg12[%c0_210, %c0_211] : memref<1x128xf32, #tpu.memory_space<vmem>>, vector<1x128xf32>
      tpu.vector_store %arg12[%c0_210, %c0_211], %152 {strides = array<i32>} : memref<1x128xf32, #tpu.memory_space<vmem>>, vector<1x128xf32>,
      %cst_212 = arith.constant 0.000000e+00 : f32
      %154 = vector.broadcast %cst_212 : f32 to vector<1x128xf32>
      %c0_213 = arith.constant 0 : index
      %c0_214 = arith.constant 0 : index
      %155 = vector.load %arg13[%c0_213, %c0_214] : memref<1x128xf32, #tpu.memory_space<vmem>>, vector<1x128xf32>
      tpu.vector_store %arg13[%c0_213, %c0_214], %154 {strides = array<i32>} : memref<1x128xf32, #tpu.memory_space<vmem>>, vector<1x128xf32>,
    } else {
    }
    %c0_198 = arith.constant 0 : index
    %c0_199 = arith.constant 0 : index
    %138 = vector.load %arg12[%c0_198, %c0_199] : memref<1x128xf32, #tpu.memory_space<vmem>>, vector<1x128xf32>
    %cst_200 = arith.constant dense<0.000000e+00> : vector<128xf32>
    %139 = vector.multi_reduction <add>, %134, %cst_200 [0] : vector<8x128xf32> to vector<128xf32>
    %140 = vector.shape_cast %139 : vector<128xf32> to vector<1x128xf32>
    %141 = arith.addf %138, %140 : vector<1x128xf32>
    %c0_201 = arith.constant 0 : index
    %c0_202 = arith.constant 0 : index
    %142 = vector.load %arg12[%c0_201, %c0_202] : memref<1x128xf32, #tpu.memory_space<vmem>>, vector<1x128xf32>
    tpu.vector_store %arg12[%c0_201, %c0_202], %141 {strides = array<i32>} : memref<1x128xf32, #tpu.memory_space<vmem>>, vector<1x128xf32>,
    %c0_203 = arith.constant 0 : index
    %c0_204 = arith.constant 0 : index
    %143 = vector.load %arg13[%c0_203, %c0_204] : memref<1x128xf32, #tpu.memory_space<vmem>>, vector<1x128xf32>
    %144 = arith.mulf %134, %134 : vector<8x128xf32>
    %cst_205 = arith.constant dense<0.000000e+00> : vector<128xf32>
    %145 = vector.multi_reduction <add>, %144, %cst_205 [0] : vector<8x128xf32> to vector<128xf32>
    %146 = vector.shape_cast %145 : vector<128xf32> to vector<1x128xf32>
    %147 = arith.addf %143, %146 : vector<1x128xf32>
    %c0_206 = arith.constant 0 : index
    %c0_207 = arith.constant 0 : index
    %148 = vector.load %arg13[%c0_206, %c0_207] : memref<1x128xf32, #tpu.memory_space<vmem>>, vector<1x128xf32>
    tpu.vector_store %arg13[%c0_206, %c0_207], %147 {strides = array<i32>} : memref<1x128xf32, #tpu.memory_space<vmem>>, vector<1x128xf32>,
    %c7_i32 = arith.constant 7 : i32
    %149 = arith.cmpi eq, %arg2, %c7_i32 : i32
    %150 = arith.extui %149 : i1 to i32
    %c0_i32_208 = arith.constant 0 : i32
    %151 = arith.cmpi ne, %150, %c0_i32_208 : i32
    scf.if %151 {
      %c0_209 = arith.constant 0 : index
      %c0_210 = arith.constant 0 : index
      %152 = vector.load %arg12[%c0_209, %c0_210] : memref<1x128xf32, #tpu.memory_space<vmem>>, vector<1x128xf32>
      %cst_211 = arith.constant 1.562500e-02 : f32
      %153 = vector.broadcast %cst_211 : f32 to vector<1x128xf32>
      %154 = arith.mulf %152, %153 : vector<1x128xf32>
      %c0_212 = arith.constant 0 : index
      %c0_213 = arith.constant 0 : index
      %155 = vector.load %arg13[%c0_212, %c0_213] : memref<1x128xf32, #tpu.memory_space<vmem>>, vector<1x128xf32>
      %cst_214 = arith.constant 1.562500e-02 : f32
      %156 = vector.broadcast %cst_214 : f32 to vector<1x128xf32>
      %157 = arith.mulf %155, %156 : vector<1x128xf32>
      %158 = arith.mulf %154, %154 : vector<1x128xf32>
      %159 = arith.subf %157, %158 : vector<1x128xf32>
      %cst_215 = arith.constant 0.000000e+00 : f32
      %160 = vector.broadcast %cst_215 : f32 to vector<1x128xf32>
      %161 = arith.maximumf %159, %160 : vector<1x128xf32>
      %c0_216 = arith.constant 0 : index
      %c0_217 = arith.constant 0 : index
      %c0_218 = arith.constant 0 : index
      %162 = vector.load %arg10[%c0_216, %c0_217, %c0_218] : memref<1x2x128xf32, #tpu.memory_space<vmem>>, vector<1x1x128xf32>
      %163 = vector.shape_cast %162 : vector<1x1x128xf32> to vector<1x128xf32>
      %164 = vector.shape_cast %154 : vector<1x128xf32> to vector<1x1x128xf32>
      tpu.vector_store %arg10[%c0_216, %c0_217, %c0_218], %164 {strides = array<i32>} : memref<1x2x128xf32, #tpu.memory_space<vmem>>, vector<1x1x128xf32>,
      %cst_219 = arith.constant 9.99999974E-6 : f32
      %165 = vector.broadcast %cst_219 : f32 to vector<1x128xf32>
      %166 = arith.addf %161, %165 : vector<1x128xf32>
      %167 = math.rsqrt %166 : vector<1x128xf32>
      %c0_220 = arith.constant 0 : index
      %c1_221 = arith.constant 1 : index
      %c0_222 = arith.constant 0 : index
      %168 = vector.load %arg10[%c0_220, %c1_221, %c0_222] : memref<1x2x128xf32, #tpu.memory_space<vmem>>, vector<1x1x128xf32>
      %169 = vector.shape_cast %168 : vector<1x1x128xf32> to vector<1x128xf32>
      %170 = vector.shape_cast %167 : vector<1x128xf32> to vector<1x1x128xf32>
      tpu.vector_store %arg10[%c0_220, %c1_221, %c0_222], %170 {strides = array<i32>} : memref<1x2x128xf32, #tpu.memory_space<vmem>>, vector<1x1x128xf32>,
    } else {
    }
    return
  }
  func.func @transform_0(%arg0: i32, %arg1: i32, %arg2: i32) -> (i32, i32, i32, i32, i32) {
    %c2_i32 = arith.constant 2 : i32
    %0 = arith.muli %arg2, %c2_i32 : i32
    %c0_i32 = arith.constant 0 : i32
    %1 = arith.addi %0, %c0_i32 : i32
    %c0_i32_0 = arith.constant 0 : i32
    %c0_i32_1 = arith.constant 0 : i32
    %c0_i32_2 = arith.constant 0 : i32
    %c0_i32_3 = arith.constant 0 : i32
    return %arg0, %1, %c0_i32_0, %c0_i32_1, %c0_i32_2 : i32, i32, i32, i32, i32
  }
  func.func @transform_1(%arg0: i32, %arg1: i32, %arg2: i32) -> (i32, i32, i32, i32, i32) {
    %c2_i32 = arith.constant 2 : i32
    %0 = arith.muli %arg2, %c2_i32 : i32
    %c1_i32 = arith.constant 1 : i32
    %1 = arith.addi %0, %c1_i32 : i32
    %c0_i32 = arith.constant 0 : i32
    %c0_i32_0 = arith.constant 0 : i32
    %c0_i32_1 = arith.constant 0 : i32
    %c0_i32_2 = arith.constant 0 : i32
    return %arg0, %1, %c0_i32, %c0_i32_0, %c0_i32_1 : i32, i32, i32, i32, i32
  }
  func.func @transform_2(%arg0: i32, %arg1: i32, %arg2: i32) -> (i32, i32, i32, i32, i32) {
    %c2_i32 = arith.constant 2 : i32
    %0 = arith.muli %arg2, %c2_i32 : i32
    %c2_i32_0 = arith.constant 2 : i32
    %1 = arith.addi %0, %c2_i32_0 : i32
    %c0_i32 = arith.constant 0 : i32
    %c0_i32_1 = arith.constant 0 : i32
    %c0_i32_2 = arith.constant 0 : i32
    %c0_i32_3 = arith.constant 0 : i32
    return %arg0, %1, %c0_i32, %c0_i32_1, %c0_i32_2 : i32, i32, i32, i32, i32
  }
  func.func @transform_3(%arg0: i32, %arg1: i32, %arg2: i32) -> (i32, i32, i32, i32, i32) {
    %c2_i32 = arith.constant 2 : i32
    %0 = arith.muli %arg2, %c2_i32 : i32
    %c3_i32 = arith.constant 3 : i32
    %1 = arith.addi %0, %c3_i32 : i32
    %c0_i32 = arith.constant 0 : i32
    %c0_i32_0 = arith.constant 0 : i32
    %c0_i32_1 = arith.constant 0 : i32
    %c0_i32_2 = arith.constant 0 : i32
    return %arg0, %1, %c0_i32, %c0_i32_0, %c0_i32_1 : i32, i32, i32, i32, i32
  }
  func.func @transform_4(%arg0: i32, %arg1: i32, %arg2: i32) -> (i32, i32, i32) {
    %c0_i32 = arith.constant 0 : i32
    %c0_i32_0 = arith.constant 0 : i32
    %c0_i32_1 = arith.constant 0 : i32
    return %c0_i32, %c0_i32_0, %arg1 : i32, i32, i32
  }
  func.func @transform_5(%arg0: i32, %arg1: i32, %arg2: i32) -> (i32, i32) {
    %c0_i32 = arith.constant 0 : i32
    %c0_i32_0 = arith.constant 0 : i32
    return %c0_i32, %arg1 : i32, i32
  }
  func.func @transform_6(%arg0: i32, %arg1: i32, %arg2: i32) -> (i32, i32, i32, i32) {
    %c0_i32 = arith.constant 0 : i32
    %c0_i32_0 = arith.constant 0 : i32
    return %arg0, %arg2, %c0_i32, %arg1 : i32, i32, i32, i32
  }
  func.func @transform_7(%arg0: i32, %arg1: i32, %arg2: i32) -> (i32, i32, i32) {
    %c0_i32 = arith.constant 0 : i32
    %c0_i32_0 = arith.constant 0 : i32
    return %arg0, %c0_i32, %arg1 : i32, i32, i32
  }
}

</mosaic_0001>

<bundles_post_ra>
// kernel: dis_block_forward.3
= control target key start
LH: loop header
LB: loop body
LE: loop exit
PB: predicated region body
PF: predicated region fallthrough
CT: control target
= control target key end

     0   :  { %s524_s9 = smov 0   ;;  %s526_s10 = smov 0   ;;  %s575_s0 = inlined_call_operand.vmem [shape: bf16[2,8,8,128], index: 0, kind: input, shape index: {}]   ;;  %s576_s1 = inlined_call_operand.vmem [shape: f32[2,2,128], index: 1, kind: input, shape index: {}]   ;;  %s577_s2 = inlined_call_operand.vmem [shape: f32[2,8,8,128], index: 2, kind: output, shape index: {}]  }
   0x1   :  { %s528_s11 = smov 0  }
   0x2 LB: > { %s31_s12 = sadd.s32 1, %s503_s10  ;;  %p432_p0 = scmp.ge.s32.totalorder %s507_s11, 1  ;;  %s507_s11 = sphi %s528_s11, %s12_s11   ;;  %s503_s10 = sphi %s526_s10, %s579_s10   ;;  %s499_s9 = sphi %s524_s9, %s578_s9  }
   0x3   : > { %p33_p1 = scmp.ge.s32.totalorder %s31_s12, 2  ;;  %p161_p2 = scmp.lt.s32.totalorder %s507_s11, 3 }
   0x5   : > { %s581_s12 = smov (%p33_p1, %s31_s12), 0  ;;  %p162_p3 = pnand %p432_p0, %p161_p2 }
   0x6   : > { %p205_p4 = scmp.lt.s32.totalorder (!%p162_p3), %s499_s9, 1 }
   0x7   : > { %165 = sbr.rel (%p162_p3) target bundleno = 33 (0x21), region = 28 }
   0xc   : > { %v254_v0 = vlaneseq  ;;  %s583_s9 = smov (!%p205_p4, %s499_s9), 1 }
   0xd   : > { %s440_s13 = sshll.u32 %s583_s9, 5  ;;  %s435_s14 = sshll.u32 %s583_s9, 1 }
   0xe   : > { %v255_v1 = vshrl.u32 %v254_v0, 7  ;;  %s215_s17 = scalar_lea.vmem %s575_s0, %s440_s13  ;;  %s223_s20 = scalar_lea.vmem %s576_s1, %s435_s14 }
   0xf   : > { %v443_v4 = vld [vmem:[%s215_s17] sm:$0xff]   ;;  %v458_v6 = vld [vmem:[%s215_s17 + $0x8] sm:$0xff]   ;;  %v459_v11 = vld [vmem:[%s215_s17 + $0x10] sm:$0xff]   ;;  %s441_s21 = sshll.u32 %s583_s9, 6 }
  0x10   : > { %v256_v2 = vsub.s32 0, %v255_v1  ;;  %v268_v3 = vsub.s32 1, %v255_v1  ;;  %v253_v5 = vld [vmem:[%s223_s20] sm:$0x3]  ;;  %v444_v7 = vunpack.c.l.bf16 %v443_v4  ;;  %v445_v10 = vunpack.c.h.bf16 %v443_v4  ;;  %v460_v12 = vld [vmem:[%s215_s17 + $0x18] sm:$0xff]   ;;  %s556_s24 = scalar_lea.vmem %s577_s2, %s441_s21 }
  0x11   : > { %v448_v13 = vunpack.c.l.bf16 %v458_v6  ;;  %v449_v14 = vunpack.c.h.bf16 %v458_v6  ;;  %v452_v15 = vunpack.c.l.bf16 %v459_v11  ;;  %v453_v16 = vunpack.c.h.bf16 %v459_v11 }
  0x12   : > { %v257_v8 = vrot.slane %v253_v5, %v256_v2  ;;  %v269_v9 = vrot.slane %v253_v5, %v268_v3  ;;  %v456_v19 = vunpack.c.l.bf16 %v460_v12  ;;  %v457_v20 = vunpack.c.h.bf16 %v460_v12 }
  0x14   : > { %v258_v17 = vsub.f32 %v444_v7, %v257_v8  ;;  %v259_v18 = vsub.f32 %v445_v10, %v257_v8  ;;  %v260_v21 = vsub.f32 %v448_v13, %v257_v8  ;;  %v261_v22 = vsub.f32 %v449_v14, %v257_v8 }
  0x15   : > { %v262_v23 = vsub.f32 %v452_v15, %v257_v8  ;;  %v263_v24 = vsub.f32 %v453_v16, %v257_v8  ;;  %v264_v27 = vsub.f32 %v456_v19, %v257_v8  ;;  %v265_v28 = vsub.f32 %v457_v20, %v257_v8 }
  0x16   : > { %v270_v25 = vmul.f32 %v269_v9, %v258_v17  ;;  %v271_v26 = vmul.f32 %v269_v9, %v259_v18  ;;  %v272_v29 = vmul.f32 %v269_v9, %v260_v21  ;;  %v273_v30 = vmul.f32 %v269_v9, %v261_v22 }
  0x17   : > { %v274_v31 = vmul.f32 %v269_v9, %v262_v23  ;;  %v275_v32 = vmul.f32 %v269_v9, %v263_v24  ;;  %v276_v44 = vmul.f32 %v269_v9, %v264_v27  ;;  %v277_v45 = vmul.f32 %v269_v9, %v265_v28 }
  0x18   : > { %vm278_vm0 = vcmp.ge.f32.partialorder %v270_v25, 0.0  ;;  %v286_v33 = vmul.f32 0.2, %v270_v25  ;;  %vm279_vm1 = vcmp.ge.f32.partialorder %v271_v26, 0.0  ;;  %v287_v34 = vmul.f32 0.2, %v271_v26 }
  0x19   : > { %vm280_vm2 = vcmp.ge.f32.partialorder %v272_v29, 0.0  ;;  %v288_v35 = vmul.f32 0.2, %v272_v29  ;;  %vm281_vm3 = vcmp.ge.f32.partialorder %v273_v30, 0.0  ;;  %v289_v36 = vmul.f32 0.2, %v273_v30 }
  0x1a   : > { %v294_v37 = vsel %vm278_vm0, %v270_v25, %v286_v33  ;;  %v295_v38 = vsel %vm279_vm1, %v271_v26, %v287_v34  ;;  %vm282_vm4 = vcmp.ge.f32.partialorder %v274_v31, 0.0  ;;  %v290_v39 = vmul.f32 0.2, %v274_v31 }
  0x1b   : > { %302 = vst [vmem:[%s556_s24] sm:$0xff] %v294_v37  ;;  %303 = vst [vmem:[%s556_s24 + $0x8] sm:$0xff] %v295_v38  ;;  %v296_v40 = vsel %vm280_vm2, %v272_v29, %v288_v35  ;;  %v297_v41 = vsel %vm281_vm3, %v273_v30, %v289_v36  ;;  %vm283_vm5 = vcmp.ge.f32.partialorder %v275_v32, 0.0  ;;  %v291_v42 = vmul.f32 0.2, %v275_v32 }
  0x1c   : > { %304 = vst [vmem:[%s556_s24 + $0x10] sm:$0xff] %v296_v40  ;;  %305 = vst [vmem:[%s556_s24 + $0x18] sm:$0xff] %v297_v41  ;;  %v298_v43 = vsel %vm282_vm4, %v274_v31, %v290_v39  ;;  %vm284_vm6 = vcmp.ge.f32.partialorder %v276_v44, 0.0  ;;  %v292_v47 = vmul.f32 0.2, %v276_v44  ;;  %vm285_vm7 = vcmp.ge.f32.partialorder %v277_v45, 0.0 }
  0x1d   : > { %306 = vst [vmem:[%s556_s24 + $0x20] sm:$0xff] %v298_v43  ;;  %v299_v46 = vsel %vm283_vm5, %v275_v32, %v291_v42  ;;  %v293_v48 = vmul.f32 0.2, %v277_v45 }
  0x1e   : > { %307 = vst [vmem:[%s556_s24 + $0x28] sm:$0xff] %v299_v46  ;;  %v300_v49 = vsel %vm284_vm6, %v276_v44, %v292_v47 }
  0x1f   : > { %v301_v50 = vsel %vm285_vm7, %v277_v45, %v293_v48  ;;  %308 = vst [vmem:[%s556_s24 + $0x30] sm:$0xff] %v300_v49 }
  0x20   : > { %309 = vst [vmem:[%s556_s24 + $0x38] sm:$0xff] %v301_v50 }
  0x21 PF: > { %s12_s11 = sadd.s32 1, %s507_s11   ;;  %s578_s9 = smov %s503_s10 }
  0x22   : > { %p9_p5 = scmp.ge.s32.totalorder %s12_s11, 4   ;;  %s579_s10 = smov %s581_s12 }
  0x24   :  { %11 = sbr.rel (!%p9_p5) target bundleno = 2 (0x2), region = 61 }

// kernel: dis_block_forward.2
= control target key start
LH: loop header
LB: loop body
LE: loop exit
PB: predicated region body
PF: predicated region fallthrough
CT: control target
= control target key end

     0   :  { %s2106_s24 = smov 0   ;;  %s2108_s25 = smov 0   ;;  %s2361_s0 = inlined_call_operand.vmem [shape: bf16[2,18,2,9,8], index: 0, kind: input, shape index: {}, may-alias: {0,1,2,3}]   ;;  %s2362_s1 = inlined_call_operand.vmem [shape: bf16[2,18,2,9,8], index: 1, kind: input, shape index: {}, may-alias: {0,1,2,3}]   ;;  %s2363_s2 = inlined_call_operand.vmem [shape: bf16[2,18,2,9,8], index: 2, kind: input, shape index: {}, may-alias: {0,1,2,3}]   ;;  %s2364_s3 = inlined_call_operand.vmem [shape: bf16[2,18,2,9,8], index: 3, kind: input, shape index: {}, may-alias: {0,1,2,3}]   ;;  %s2365_s4 = inlined_call_operand.vmem [shape: bf16[16,8,128], index: 4, kind: input, shape index: {}]   ;;  %s2366_s5 = inlined_call_operand.vmem [shape: f32[1,128], index: 5, kind: input, shape index: {}]   ;;  %s2367_s6 = inlined_call_operand.vmem [shape: bf16[2,8,8,128], index: 6, kind: output, shape index: {0}]   ;;  %s2368_s7 = inlined_call_operand.vmem [shape: f32[2,2,128], index: 7, kind: output, shape index: {1}]  }
   0x1   :  { %s2110_s26 = smov 0   ;;  %s2112_s27 = smov 0  }
   0x2   :  { %s2114_s28 = smov 0  }
   0x3 LB: > { %s30_s29 = sadd.s32 1, %s2053_s26  ;;  %s37_s30 = sadd.s32 1, %s2057_s27  ;;  %s2061_s28 = sphi %s2114_s28, %s18_s28   ;;  %s2057_s27 = sphi %s2112_s27, %s2374_s27   ;;  %s2053_s26 = sphi %s2110_s26, %s2373_s26   ;;  %s2049_s25 = sphi %s2108_s25, %s2372_s25   ;;  %s2045_s24 = sphi %s2106_s24, %s2371_s24  }
   0x4   : > { %p31_p0 = scmp.ge.s32.totalorder %s30_s29, 8  ;;  %p1769_p1 = scmp.ge.s32.totalorder %s2061_s28, 1 }
   0x5   : > { %p364_p2 = scmp.lt.s32.totalorder %s2061_s28, 17 }
   0x6   : > { %s2376_s29 = smov (%p31_p0, %s30_s29), 0  ;;  %s2378_s30 = smov (!%p31_p0, %s37_s30), %s2057_s27 }
   0x7   : > { %p365_p3 = pnand %p1769_p1, %p364_p2  ;;  %p39_p4 = scmp.ge.s32.totalorder %s2378_s30, 2 }
   0x8   : > { %s2151_s12 = sshll.u32 (!%p365_p3), %s2045_s24, 1  ;;  %p455_p5 = scmp.lt.s32.totalorder (!%p365_p3), %s2049_s25, 1 }
   0x9   : > { %s2380_s30 = smov (%p39_p4, %s2378_s30), 0  ;;  %368 = sbr.rel (%p365_p3) target bundleno = 330 (0x14a), region = 44 }
   0xa   : > { %p457_p6 = scmp.lt.s32.totalorder (!%p365_p3), %s2151_s12, 17  ;;  %s466_s13 = sadd.s32 (!%p365_p3), 1, %s2151_s12 }
   0xb   : > { %p2184_p7 = scmp.lt.s32.totalorder (!%p365_p3), %s466_s13, 17  ;;  %s492_s8 = sadd.s32 (!%p365_p3), 3, %s2151_s12 }
   0xc   : > { %p495_p9 = scmp.lt.s32.totalorder (!%p365_p3), %s492_s8, 17  ;;  %p513_p10 = scmp.lt.s32.totalorder (!%p365_p3), %s2045_s24, 7 }
   0xd   : > { %p1837_p11 = scmp.ne.s32.totalorder (!%p365_p3), %s2045_s24, 0 }
   0xe   : > { %v531_v0 = vld [vmem:[%s2365_s4] sm:$0xf]  ;;  %vm536_vm0 = vcmask 1043456   ;;  %v1787_v1 = vld [vmem:[%s2365_s4 + $0x4] sm:$0xf]  ;;  %v2063_v2 = vmov 0.0  }
   0xf   : > { %1873 = vmatprep.subr.bf16.mxu0 %v2063_v2  ;;  %v538_v3 = vsel %vm536_vm0, %v531_v0, 0  ;;  %1879 = vmatprep.subr.bf16.mxu1 %v2063_v2  ;;  %v589_v4 = vsel %vm536_vm0, %v1787_v1, 0  ;;  %vm2064_vm1 = vmmov 0   ;;  %s2382_s25 = smov (!%p455_p5, %s2049_s25), 1  ;;  %v1789_v5 = vld [vmem:[%s2365_s4 + $0x8] sm:$0xf] }
  0x10   : > { %1874 = vmatpush3.bf16.msra.mxu0 %v538_v3  ;;  %1880 = vmatpush3.bf16.msra.mxu1 %v589_v4  ;;  %s458_s14 = scalar_select %p457_p6, %s2151_s12, 17  ;;  %v1794_v6 = vld [vmem:[%s2365_s4 + $0xc] sm:$0xf]  ;;  %vm532_vm2 = vcmask 64512   ;;  %v654_v7 = vsel %vm536_vm0, %v1789_v5, 0 }
  0x11   : > { %1875 = vmatprep.mubr.msk.bf16.mxu0 %vm2064_vm1, %v2063_v2  ;;  %1881 = vmatprep.mubr.msk.bf16.mxu1 %vm2064_vm1, %v2063_v2  ;;  %s2167_s15 = smul.u32 72, %s2382_s25  ;;  %s1784_s16 = sshll.u32 %s2382_s25, 1  ;;  %v719_v8 = vsel %vm536_vm0, %v1794_v6, 0  ;;  %v1797_v17 = vld [vmem:[%s2365_s4 + $0x10] sm:$0xf] }
  0x12   : > { %1885 = vmatprep.subr.bf16.mxu0 %v2063_v2  ;;  %1891 = vmatprep.subr.bf16.mxu1 %v2063_v2  ;;  %s1771_s17 = sshll.u32 %s458_s14, 2  ;;  %s2173_s20 = scalar_lea.vmem %s2368_s7, %s1784_s16  ;;  %v1800_v19 = vld [vmem:[%s2365_s4 + $0x14] sm:$0xf]  ;;  %v771_v22 = vsel %vm536_vm0, %v1797_v17, 0  ;;  %v1802_v27 = vld [vmem:[%s2365_s4 + $0x18] sm:$0xf] }
  0x13   : > { %s461_s9 = sadd.s32 %s2167_s15, %s1771_s17  ;;  %s479_s14 = sadd.s32 2, %s2151_s12  ;;  %v824_v24 = vsel %vm536_vm0, %v1800_v19, 0  ;;  %v1807_v28 = vld [vmem:[%s2365_s4 + $0x1c] sm:$0xf]  ;;  %v889_v33 = vsel %vm536_vm0, %v1802_v27, 0 }
  0x14   : > { %s1772_s11 = sshll.u32 %s461_s9, 2  ;;  %p2194_p8 = scmp.lt.s32.totalorder %s479_s14, 17  ;;  %v954_v34 = vsel %vm536_vm0, %v1807_v28, 0  ;;  %v1810_v39 = vld [vmem:[%s2365_s4 + $0x20] sm:$0xf] }
  0x15   : > { %s463_s19 = scalar_lea.vmem %s2361_s0, %s1772_s11  ;;  %s2384_s13 = smov (!%p2184_p7, %s466_s13), 17  ;;  %v1813_v41 = vld [vmem:[%s2365_s4 + $0x24] sm:$0xf]  ;;  %v1006_v43 = vsel %vm536_vm0, %v1810_v39, 0  ;;  %v1815_v47 = vld [vmem:[%s2365_s4 + $0x28] sm:$0xf] }
  0x16   : > { %v530_v9 = vld [vmem:[%s463_s19] sm:$0xf]  ;;  %v1786_v10 = vld [vmem:[%s463_s19 + $0x8] sm:$0xf]  ;;  %s2386_s14 = smov (!%p2194_p8, %s479_s14), 17  ;;  %s1774_s23 = sshll.u32 %s2384_s13, 2 }
  0x17   : > { %1876 = vmatmul.mubr.msk.bf16.vlgmr.msra.gmra.mxu0 %vm532_vm2, %v530_v9  ;;  %1882 = vmatmul.mubr.msk.bf16.vlgmr.msra.gmra.mxu1 %vm532_vm2, %v1786_v10  ;;  %v2013_v11 = vld [vmem:[%s463_s19] sm:$0x1f]   ;;  %v2014_v12 = vld [vmem:[%s463_s19 + $0x8] sm:$0x1f]   ;;  %s473_s10 = sadd.s32 %s2167_s15, %s1774_s23  ;;  %s1777_s11 = sshll.u32 %s2386_s14, 2  ;;  %v1059_v44 = vsel %vm536_vm0, %v1813_v41, 0 }
  0x18   : > { %1886 = vmatpush3.bf16.msra.mxu0 %v654_v7  ;;  %1892 = vmatpush3.bf16.msra.mxu1 %v719_v8  ;;  %v644_v13 = vshrl.u32 %v2013_v11, 16  ;;  %v646_v14 = vshll.u32 %v2013_v11, 16  ;;  %v709_v15 = vshrl.u32 %v2014_v12, 16  ;;  %v711_v16 = vshll.u32 %v2014_v12, 16  ;;  %s1775_s16 = sshll.u32 %s473_s10, 2  ;;  %s486_s18 = sadd.s32 %s2167_s15, %s1777_s11 }
  0x19   : > { %1887 = vmatprep.mubr.msk.bf16.mxu0 %vm2064_vm1, %v2063_v2  ;;  %1893 = vmatprep.mubr.msk.bf16.mxu1 %vm2064_vm1, %v2063_v2  ;;  %s475_s21 = scalar_lea.vmem %s2362_s1, %s1775_s16  ;;  %s1778_s22 = sshll.u32 %s486_s18, 2  ;;  %v1820_v48 = vld [vmem:[%s2365_s4 + $0x2c] sm:$0xf]  ;;  %v1124_v53 = vsel %vm536_vm0, %v1815_v47, 0  ;;  %v1823_v59 = vld [vmem:[%s2365_s4 + $0x30] sm:$0xf] }
  0x1a   : > { %1897 = vmatprep.subr.bf16.mxu0 %v2063_v2  ;;  %1903 = vmatprep.subr.bf16.mxu1 %v2063_v2  ;;  %v648_v18 = vrot.slane %v646_v14, 1  ;;  %v713_v20 = vrot.slane %v711_v16, 1  ;;  %v2015_v25 = vld [vmem:[%s475_s21] sm:$0x1f]   ;;  %v2016_v26 = vld [vmem:[%s475_s21 + $0x8] sm:$0x1f]   ;;  %s2230_s23 = scalar_lea.vmem %s2363_s2, %s1778_s22 }
  0x1b   : > { %v881_v29 = vshll.u32 %v2015_v25, 16  ;;  %v764_v30 = vld [vmem:[%s475_s21] sm:$0xf]  ;;  %v946_v31 = vshll.u32 %v2016_v26, 16  ;;  %v1799_v32 = vld [vmem:[%s475_s21 + $0x8] sm:$0xf] }
  0x1c   : > { %v649_v21 = vor.u32 %v648_v18, %v644_v13  ;;  %v714_v23 = vor.u32 %v713_v20, %v709_v15  ;;  %s2388_s8 = smov (!%p495_p9, %s492_s8), 17  ;;  %v879_v35 = vshrl.u32 %v2015_v25, 16  ;;  %v944_v37 = vshrl.u32 %v2016_v26, 16  ;;  %v2017_v45 = vld [vmem:[%s2230_s23] sm:$0x1f]  }
  0x1d   : > { %v883_v36 = vrot.slane %v881_v29, 1  ;;  %s1780_s12 = sshll.u32 %s2388_s8, 2  ;;  %v948_v38 = vrot.slane %v946_v31, 1  ;;  %v2018_v46 = vld [vmem:[%s2230_s23 + $0x8] sm:$0x1f]   ;;  %v1116_v49 = vshll.u32 %v2017_v45, 16 }
  0x1e   : > { %s499_s18 = sadd.s32 %s2167_s15, %s1780_s12  ;;  %v999_v50 = vld [vmem:[%s2230_s23] sm:$0xf]  ;;  %v1181_v51 = vshll.u32 %v2018_v46, 16  ;;  %v1812_v52 = vld [vmem:[%s2230_s23 + $0x8] sm:$0xf]  ;;  %v1189_v54 = vsel %vm536_vm0, %v1820_v48, 0 }
  0x1f   : > { %1888 = vmatmul.mubr.msk.bf16.vlgmr.msra.gmra.mxu0 %vm532_vm2, %v649_v21  ;;  %1894 = vmatmul.mubr.msk.bf16.vlgmr.msra.gmra.mxu1 %vm532_vm2, %v714_v23  ;;  %s1781_s19 = sshll.u32 %s499_s18, 2  ;;  %v884_v40 = vor.u32 %v883_v36, %v879_v35  ;;  %v949_v42 = vor.u32 %v948_v38, %v944_v37  ;;  %v1114_v55 = vshrl.u32 %v2017_v45, 16  ;;  %v1118_v56 = vrot.slane %v1116_v49, 1  ;;  %v1826_v61 = vld [vmem:[%s2365_s4 + $0x34] sm:$0xf]  ;;  %s1782_s15 = sshll.u32 %s2382_s25, 3 }
  0x20   : > { %1898 = vmatpush3.bf16.msra.mxu0 %v771_v22  ;;  %1904 = vmatpush3.bf16.msra.mxu1 %v824_v24  ;;  %s2261_s14 = scalar_lea.vmem %s2364_s3, %s1781_s19  ;;  %v1179_v57 = vshrl.u32 %v2018_v46, 16  ;;  %v1183_v58 = vrot.slane %v1181_v51, 1  ;;  %v1241_v63 = vsel %vm536_vm0, %v1823_v59, 0  ;;  %v1294_v0 = vsel %vm536_vm0, %v1826_v61, 0  ;;  %v1828_v4 = vld [vmem:[%s2365_s4 + $0x38] sm:$0xf] }
  0x21   : > { %1899 = vmatprep.mubr.msk.bf16.mxu0 %vm2064_vm1, %v2063_v2  ;;  %1905 = vmatprep.mubr.msk.bf16.mxu1 %vm2064_vm1, %v2063_v2  ;;  %v1119_v60 = vor.u32 %v1118_v56, %v1114_v55  ;;  %v2019_v1 = vld [vmem:[%s2261_s14] sm:$0x1f]   ;;  %v2020_v3 = vld [vmem:[%s2261_s14 + $0x8] sm:$0x1f]   ;;  %v1833_v5 = vld [vmem:[%s2365_s4 + $0x3c] sm:$0xf] }
  0x22   : > { %1909 = vmatprep.subr.bf16.mxu0 %v2063_v2  ;;  %1915 = vmatprep.subr.bf16.mxu1 %v2063_v2  ;;  %v1184_v62 = vor.u32 %v1183_v58, %v1179_v57  ;;  %v1351_v6 = vshll.u32 %v2019_v1, 16  ;;  %v1234_v7 = vld [vmem:[%s2261_s14] sm:$0xf]  ;;  %v1416_v8 = vshll.u32 %v2020_v3, 16  ;;  %v1825_v9 = vld [vmem:[%s2261_s14 + $0x8] sm:$0xf] }
  0x23   : > { %v1359_v10 = vsel %vm536_vm0, %v1828_v4, 0  ;;  %v1424_v11 = vsel %vm536_vm0, %v1833_v5, 0  ;;  %v1349_v12 = vshrl.u32 %v2019_v1, 16  ;;  %v1414_v14 = vshrl.u32 %v2020_v3, 16  ;;  %s514_s14 = scalar_select %p513_p10, %s2045_s24, 7 }
  0x24   : > { %v1353_v13 = vrot.slane %v1351_v6, 1  ;;  %v1418_v15 = vrot.slane %v1416_v8, 1 }
  0x25   : > { %s519_s8 = sadd.s32 %s1782_s15, %s514_s14 }
  0x26   : > { %v1354_v16 = vor.u32 %v1353_v13, %v1349_v12  ;;  %v1419_v17 = vor.u32 %v1418_v15, %v1414_v14  ;;  %s1783_s11 = sshll.u32 %s519_s8, 2 }
  0x27   : > { %1900 = vmatmul.mubr.msk.bf16.vlgmr.msra.gmra.mxu0 %vm532_vm2, %v764_v30  ;;  %1906 = vmatmul.mubr.msk.bf16.vlgmr.msra.gmra.mxu1 %vm532_vm2, %v1799_v32  ;;  %s521_s23 = scalar_lea.vmem %s2367_s6, %s1783_s11 }
  0x28   : > { %1910 = vmatpush3.bf16.msra.mxu0 %v889_v33  ;;  %1916 = vmatpush3.bf16.msra.mxu1 %v954_v34 }
  0x29   : > { %1911 = vmatprep.mubr.msk.bf16.mxu0 %vm2064_vm1, %v2063_v2  ;;  %1917 = vmatprep.mubr.msk.bf16.mxu1 %vm2064_vm1, %v2063_v2 }
  0x2a   : > { %1921 = vmatprep.subr.bf16.mxu0 %v2063_v2  ;;  %1927 = vmatprep.subr.bf16.mxu1 %v2063_v2 }
  0x2f   : > { %1912 = vmatmul.mubr.msk.bf16.vlgmr.msra.gmra.mxu0 %vm532_vm2, %v884_v40  ;;  %1918 = vmatmul.mubr.msk.bf16.vlgmr.msra.gmra.mxu1 %vm532_vm2, %v949_v42 }
  0x30   : > { %1922 = vmatpush3.bf16.msra.mxu0 %v1006_v43  ;;  %1928 = vmatpush3.bf16.msra.mxu1 %v1059_v44 }
  0x31   : > { %1923 = vmatprep.mubr.msk.bf16.mxu0 %vm2064_vm1, %v2063_v2  ;;  %1929 = vmatprep.mubr.msk.bf16.mxu1 %vm2064_vm1, %v2063_v2 }
  0x32   : > { %1933 = vmatprep.subr.bf16.mxu0 %v2063_v2  ;;  %1939 = vmatprep.subr.bf16.mxu1 %v2063_v2 }
  0x37   : > { %1924 = vmatmul.mubr.msk.bf16.vlgmr.msra.gmra.mxu0 %vm532_vm2, %v999_v50  ;;  %1930 = vmatmul.mubr.msk.bf16.vlgmr.msra.gmra.mxu1 %vm532_vm2, %v1812_v52 }
  0x38   : > { %1934 = vmatpush3.bf16.msra.mxu0 %v1124_v53  ;;  %1940 = vmatpush3.bf16.msra.mxu1 %v1189_v54 }
  0x39   : > { %1935 = vmatprep.mubr.msk.bf16.mxu0 %vm2064_vm1, %v2063_v2  ;;  %1941 = vmatprep.mubr.msk.bf16.mxu1 %vm2064_vm1, %v2063_v2 }
  0x3a   : > { %1945 = vmatprep.subr.bf16.mxu0 %v2063_v2  ;;  %1951 = vmatprep.subr.bf16.mxu1 %v2063_v2 }
  0x3f   : > { %1936 = vmatmul.mubr.msk.bf16.vlgmr.msra.gmra.mxu0 %vm532_vm2, %v1119_v60  ;;  %1942 = vmatmul.mubr.msk.bf16.vlgmr.msra.gmra.mxu1 %vm532_vm2, %v1184_v62 }
  0x40   : > { %1946 = vmatpush3.bf16.msra.mxu0 %v1241_v63  ;;  %1952 = vmatpush3.bf16.msra.mxu1 %v1294_v0 }
  0x41   : > { %1947 = vmatprep.mubr.msk.bf16.mxu0 %vm2064_vm1, %v2063_v2  ;;  %1953 = vmatprep.mubr.msk.bf16.mxu1 %vm2064_vm1, %v2063_v2 }
  0x42   : > { %1957 = vmatprep.subr.bf16.mxu0 %v2063_v2  ;;  %1963 = vmatprep.subr.bf16.mxu1 %v2063_v2 }
  0x47   : > { %1948 = vmatmul.mubr.msk.bf16.vlgmr.msra.gmra.mxu0 %vm532_vm2, %v1234_v7  ;;  %1954 = vmatmul.mubr.msk.bf16.vlgmr.msra.gmra.mxu1 %vm532_vm2, %v1825_v9 }
  0x48   : > { %1958 = vmatpush3.bf16.msra.mxu0 %v1359_v10  ;;  %1964 = vmatpush3.bf16.msra.mxu1 %v1424_v11 }
  0x49   : > { %1959 = vmatprep.mubr.msk.bf16.mxu0 %vm2064_vm1, %v2063_v2  ;;  %1965 = vmatprep.mubr.msk.bf16.mxu1 %vm2064_vm1, %v2063_v2 }
  0x4f   : > { %1960 = vmatmul.mubr.msk.bf16.vlgmr.msra.gmra.mxu0 %vm532_vm2, %v1354_v16  ;;  %1966 = vmatmul.mubr.msk.bf16.vlgmr.msra.gmra.mxu1 %vm532_vm2, %v1419_v17 }
  0xd7   : > { %v574_v18 = vpop.f32.mrf.mxu0  ;;  %v625_v19 = vpop.f32.mrf.mxu1 }
  0xd8   : > { %v632_v36 = vadd.f32 %v625_v19, %v574_v18 }
  0xd9   : > { %v1877_v20 = vpop.f32.mrf.mxu0  ;;  %v1883_v21 = vpop.f32.mrf.mxu1 }
  0xdb   : > { %v577_v22 = vpop.f32.mrf.mxu0  ;;  %v628_v23 = vpop.f32.mrf.mxu1 }
  0xdd   : > { %v1878_v24 = vpop.f32.mrf.mxu0  ;;  %v1884_v25 = vpop.f32.mrf.mxu1 }
  0xdf   : > { %v690_v26 = vpop.f32.mrf.mxu0  ;;  %v755_v27 = vpop.f32.mrf.mxu1 }
  0xe0   : > { %v697_v39 = vadd.f32 %v690_v26, %v632_v36  ;;  %v1836_v26 = vld [vmem:[%s2366_s5] ss:$0 sm:$0xff] }
  0xe1   : > { %v1889_v28 = vpop.f32.mrf.mxu0  ;;  %v1895_v29 = vpop.f32.mrf.mxu1 }
  0xe2   : > { %v762_v44 = vadd.f32 %v755_v27, %v697_v39 }
  0xe3   : > { %v693_v30 = vpop.f32.mrf.mxu0  ;;  %v758_v2 = vpop.f32.mrf.mxu1 }
  0xe5   : > { %v1890_v31 = vpop.f32.mrf.mxu0  ;;  %v1896_v32 = vpop.f32.mrf.mxu1 }
  0xe7   : > { %v807_v33 = vpop.f32.mrf.mxu0  ;;  %v860_v34 = vpop.f32.mrf.mxu1 }
  0xe8   : > { %v814_v47 = vadd.f32 %v807_v33, %v762_v44 }
  0xe9   : > { %v1901_v35 = vpop.f32.mrf.mxu0  ;;  %v1907_v37 = vpop.f32.mrf.mxu1 }
  0xea   : > { %v867_v52 = vadd.f32 %v860_v34, %v814_v47 }
  0xeb   : > { %v810_v38 = vpop.f32.mrf.mxu0  ;;  %v863_v40 = vpop.f32.mrf.mxu1 }
  0xed   : > { %v1902_v41 = vpop.f32.mrf.mxu0  ;;  %v1908_v42 = vpop.f32.mrf.mxu1 }
  0xef   : > { %v925_v43 = vpop.f32.mrf.mxu0  ;;  %v990_v45 = vpop.f32.mrf.mxu1 }
  0xf0   : > { %v932_v55 = vadd.f32 %v925_v43, %v867_v52 }
  0xf1   : > { %v1913_v46 = vpop.f32.mrf.mxu0  ;;  %v1919_v48 = vpop.f32.mrf.mxu1 }
  0xf2   : > { %v997_v60 = vadd.f32 %v990_v45, %v932_v55 }
  0xf3   : > { %v928_v49 = vpop.f32.mrf.mxu0  ;;  %v993_v50 = vpop.f32.mrf.mxu1 }
  0xf5   : > { %v1914_v51 = vpop.f32.mrf.mxu0  ;;  %v1920_v53 = vpop.f32.mrf.mxu1 }
  0xf7   : > { %v1042_v54 = vpop.f32.mrf.mxu0  ;;  %v1095_v56 = vpop.f32.mrf.mxu1 }
  0xf8   : > { %v1049_v63 = vadd.f32 %v1042_v54, %v997_v60 }
  0xf9   : > { %v1925_v57 = vpop.f32.mrf.mxu0  ;;  %v1931_v58 = vpop.f32.mrf.mxu1 }
  0xfa   : > { %v1102_v5 = vadd.f32 %v1095_v56, %v1049_v63 }
  0xfb   : > { %v1045_v59 = vpop.f32.mrf.mxu0  ;;  %v1098_v61 = vpop.f32.mrf.mxu1 }
  0xfd   : > { %v1926_v62 = vpop.f32.mrf.mxu0  ;;  %v1932_v0 = vpop.f32.mrf.mxu1 }
  0xff   : > { %v1160_v1 = vpop.f32.mrf.mxu0  ;;  %v1225_v3 = vpop.f32.mrf.mxu1 }
 0x100   : > { %v1167_v8 = vadd.f32 %v1160_v1, %v1102_v5 }
 0x101   : > { %v1937_v4 = vpop.f32.mrf.mxu0  ;;  %v1943_v6 = vpop.f32.mrf.mxu1 }
 0x102   : > { %v1232_v13 = vadd.f32 %v1225_v3, %v1167_v8 }
 0x103   : > { %v1163_v7 = vpop.f32.mrf.mxu0  ;;  %v1228_v9 = vpop.f32.mrf.mxu1 }
 0x105   : > { %v1938_v10 = vpop.f32.mrf.mxu0  ;;  %v1944_v11 = vpop.f32.mrf.mxu1 }
 0x107   : > { %v1277_v12 = vpop.f32.mrf.mxu0  ;;  %v1330_v14 = vpop.f32.mrf.mxu1 }
 0x108   : > { %v1284_v16 = vadd.f32 %v1277_v12, %v1232_v13 }
 0x109   : > { %v1949_v15 = vpop.f32.mrf.mxu0  ;;  %v1955_v17 = vpop.f32.mrf.mxu1 }
 0x10a   : > { %v1337_v21 = vadd.f32 %v1330_v14, %v1284_v16 }
 0x10b   : > { %v1280_v18 = vpop.f32.mrf.mxu0  ;;  %v1333_v19 = vpop.f32.mrf.mxu1 }
 0x10d   : > { %v1950_v20 = vpop.f32.mrf.mxu0  ;;  %v1956_v22 = vpop.f32.mrf.mxu1 }
 0x10f   : > { %v1395_v23 = vpop.f32.mrf.mxu0  ;;  %v1460_v25 = vpop.f32.mrf.mxu1 }
 0x110   : > { %v1402_v24 = vadd.f32 %v1395_v23, %v1337_v21 }
 0x111   : > { %v1961_v27 = vpop.f32.mrf.mxu0  ;;  %v1967_v29 = vpop.f32.mrf.mxu1 }
 0x112   : > { %v1467_v28 = vadd.f32 %v1460_v25, %v1402_v24 }
 0x113   : > { %v1398_v30 = vpop.f32.mrf.mxu0  ;;  %v1463_v31 = vpop.f32.mrf.mxu1 }
 0x114   : > { %v1477_v2 = vadd.f32 %v1836_v26, %v1467_v28  ;;  %1484 = sbr.rel (%p1837_p11) target bundleno = 283 (0x11b), region = 48 }
 0x115   : > { %v1962_v32 = vpop.f32.mrf.mxu0  ;;  %v1968_v34 = vpop.f32.mrf.mxu1 }
 0x116   : > { %v1478_v33 = vpack.c.bf16 %v1477_v2, %v1477_v2 }
 0x118   : > { %1479 = vst [vmem:[%s521_s23] sm:$0xf] %v1478_v33  ;;  %v1480_v35 = vunpack.c.l.bf16 %v1478_v33 }
 0x119   : > { %v2065_v36 = vmov 0.0  }
 0x11a   : > { %1485 = vst [vmem:[#allocation3] sm:$0x1] %v2065_v36  ;;  %1486 = vst [vmem:[#allocation4] sm:$0x1] %v2065_v36 }
 0x11b PF: > { %v1488_v37 = vrot.slane %v1480_v35, 4  ;;  %v1497_v38 = vmul.f32 %v1480_v35, %v1480_v35  ;;  %p1838_p12 = scmp.ne.s32.totalorder %s2045_s24, 7 }
 0x11d   : > { %v1489_v39 = vadd.f32 %v1488_v37, %v1480_v35  ;;  %v1498_v40 = vrot.slane %v1497_v38, 4 }
 0x11f   : > { %v1490_v41 = vrot.slane %v1489_v39, 2  ;;  %v1499_v42 = vadd.f32 %v1498_v40, %v1497_v38 }
 0x121   : > { %v1491_v43 = vadd.f32 %v1490_v41, %v1489_v39  ;;  %v1500_v44 = vrot.slane %v1499_v42, 2  ;;  %v1487_v47 = vld [vmem:[#allocation3] sm:$0x1]  ;;  %v1496_v50 = vld [vmem:[#allocation4] sm:$0x1] }
 0x123   : > { %v1492_v45 = vrot.slane %v1491_v43, 1  ;;  %v1501_v46 = vadd.f32 %v1500_v44, %v1499_v42 }
 0x125   : > { %v1493_v48 = vadd.f32 %v1492_v45, %v1491_v43  ;;  %v1502_v49 = vrot.slane %v1501_v46, 1 }
 0x127   : > { %v1494_v51 = vadd.f32 %v1493_v48, %v1487_v47  ;;  %v1503_v52 = vadd.f32 %v1502_v49, %v1501_v46  ;;  %1509 = sbr.rel (%p1838_p12) target bundleno = 330 (0x14a), region = 52 }
 0x129   : > { %1495 = vst [vmem:[#allocation3] sm:$0x1] %v1494_v51  ;;  %v1504_v53 = vadd.f32 %v1503_v52, %v1496_v50 }
 0x12b   : > { %1505 = vst [vmem:[#allocation4] sm:$0x1] %v1504_v53 }
 0x130   : > { %v1510_v54 = vld [vmem:[#allocation3] sm:$0x1] }
 0x131   : > { %v1511_v56 = vmul.f32 0.015625, %v1510_v54 }
 0x132   : > { %v1512_v55 = vld [vmem:[#allocation4] sm:$0x1] }
 0x133   : > { %v1513_v57 = vmul.f32 0.015625, %v1512_v55  ;;  %v1514_v58 = vmul.f32 %v1511_v56, %v1511_v56  ;;  %1517 = vst [vmem:[%s2173_s20] sm:$0x1] %v1511_v56 }
 0x135   : > { %v1515_v59 = vsub.f32 %v1513_v57, %v1514_v58 }
 0x137   : > { %v1516_v60 = vmax.f32 %v1515_v59, 0.0 }
 0x139   : > { %v1518_v61 = vadd.f32 1e-05, %v1516_v60 }
 0x13b   : > { %2021 = vrsqrt.f32 %v1518_v61 }
 0x148   : > { %v2022_v62 = vpop.eup %2021 }
 0x149   : > { %1520 = vst [vmem:[%s2173_s20 + $0x1] sm:$0x1] %v2022_v62 }
 0x14a PF: > { %s18_s28 = sadd.s32 1, %s2061_s28   ;;  %s2371_s24 = smov %s2053_s26 }
 0x14b   : > { %p15_p13 = scmp.ge.s32.totalorder %s18_s28, 18   ;;  %s2372_s25 = smov %s2057_s27 }
 0x14c   : > { %s2373_s26 = smov %s2376_s29  ;;  %s2374_s27 = smov %s2380_s30 }
 0x14d   :  { %17 = sbr.rel (!%p15_p13) target bundleno = 3 (0x3), region = 128 }

</bundles_post_ra>
